<compile_context>
chip_gen: v6e
topology: v6e:2x2x1
jax: 0.10.0
libtpu: 0.0.40
codegen_flags: <defaults>
</compile_context>

<pallas_src>
import jax
import jax.numpy as jnp
from jax.experimental import pallas as pl
from jax.experimental.pallas import tpu as pltpu


def _round_up(x, m):
    return ((x + m - 1) // m) * m


def _device_kind():
    try:
        return jax.devices()[0].device_kind.lower()
    except Exception:
        return ""


def _num_tensorcores_per_chip():
    # v7x exposes 2 TensorCores per chip; v5e / v6e have 1.  Unknown -> assume
    # 1 (single largest tile; only mildly suboptimal on v7x).
    return 2 if "v7" in _device_kind() else 1


def _elu1_in_bf16():
    # bf16 VPU/EUP exist on v6e / v7x; v5e has neither, so keep ELU1 in f32
    # there (and whenever the generation can't be identified).
    kind = _device_kind()
    return ("v6" in kind) or ("v7" in kind)


def _elu(x):
    # ELU (alpha=1.0), matching torch.nn.functional.elu.  Inference-only: the
    # exp() of the untaken branch may overflow but jnp.where discards it.
    # TODO(synk): re-add a jnp.minimum(x, 0) clamp if differentiating through
    # this kernel (where-gradient would otherwise produce inf*0 = NaN).
    return jnp.where(x > 0, x, jnp.exp(x) - 1.0)


def _make_mine_kernel(elu1_bf16):
    def mine_kernel(xT_ref, w1_ref, b1_ref, w2_ref, b2_ref, w3_ref, b3_ref, o_ref):
        xT = xT_ref[...]            # (in_dim, tile_b) f32  -- batch on lanes
        w1 = w1_ref[...]            # (H, in_dim)      f32
        in_dim = xT.shape[0]        # static (2)

        # ---- fc1: K = in_dim (tiny) -> VPU broadcast FMAs, MXU stays free ---
        acc = b1_ref[...]           # (H, 1), broadcasts over lanes
        for k in range(in_dim):     # static unroll
            acc = acc + w1[:, k:k + 1] * xT[k:k + 1, :]

        # ---- ELU1 + fc2 feed: packed bf16 on v6e/v7x, f32+cast on v5e -------
        w2 = w2_ref[...]            # (H, H), bf16 (or f32 if use_bf16=False)
        if elu1_bf16:
            h1 = _elu(acc.astype(w2.dtype))          # (H, tile_b) bf16
        else:
            h1 = _elu(acc).astype(w2.dtype)          # f32 ELU, explicit cast

        # ---- fc2: the one real matmul; f32 accumulate, f32 epilogue ---------
        h2 = jnp.dot(w2, h1, preferred_element_type=jnp.float32)
        h2 = _elu(h2 + b2_ref[...])                  # (H, tile_b) f32

        # ---- fc3: N = 1 -> VPU multiply + sublane reduce; lane-dense out ----
        out = jnp.sum(h2 * w3_ref[...], axis=0, keepdims=True) + b3_ref[...]
        o_ref[0] = out.astype(o_ref.dtype)           # (1, tile_b)
    return mine_kernel


def prepare_params(params, *, use_bf16=True):
    """One-time packing of params into the kernel layout.

    Call once after init / checkpoint load and reuse for every forward call:
    the pad / transpose / bf16-cast HLOs are hoisted out of the per-call path.
    Input weights are stored as [in_features, out_features] (transposed vs
    torch.nn.Linear).
    """
    in_dim, hidden = params["w1"].shape
    H = _round_up(max(hidden, 128), 128)     # lane/sublane-aligned hidden dim
    f32 = jnp.float32
    mm_dtype = jnp.bfloat16 if use_bf16 else f32

    w1k = jnp.zeros((H, in_dim), f32).at[:hidden, :].set(params["w1"].T.astype(f32))
    b1k = jnp.zeros((H, 1), f32).at[:hidden, 0].set(params["b1"].reshape(-1).astype(f32))
    w2k = (jnp.zeros((H, H), f32)
           .at[:hidden, :hidden].set(params["w2"].T.astype(f32))
           .astype(mm_dtype))
    b2k = jnp.zeros((H, 1), f32).at[:hidden, 0].set(params["b2"].reshape(-1).astype(f32))
    w3k = jnp.zeros((H, 1), f32).at[:hidden, :].set(params["w3"].astype(f32))
    b3k = params["b3"].reshape(1, 1).astype(f32)

    return {"w1": w1k, "b1": b1k, "w2": w2k, "b2": b2k, "w3": w3k, "b3": b3k,
            "in_dim": int(in_dim), "H": int(H)}


def mine_net_forward(x, packed, *, tile_b=4096):
    """x: [B, input_size] f32.  `packed` comes from prepare_params (one-time)."""
    B, in_dim = x.shape
    assert in_dim == packed["in_dim"]
    H = packed["H"]
    f32 = jnp.float32

    # ---- batch tile selection ----------------------------------------------
    # Per batch column the kernel needs ~1.3 KB of VMEM (x + h1 f32 + h1 bf16 +
    # h2 f32 + out), so tile_b=4096 is ~5-6 MiB plus ~100 KB of weights: well
    # under the default scoped VMEM on v5e/v6e/v7x.  Big tiles amortize the
    # ~0.35 us per-grid-step overhead that otherwise dominates this kernel.
    tile_b = max(128, _round_up(min(tile_b, max(B, 1)), 128))
    n_cores = _num_tensorcores_per_chip()
    if n_cores >= 2 and pl.cdiv(B, tile_b) < n_cores and B > 128:
        # v7x only: split so both TensorCores get work on the "parallel" axis.
        tile_b = max(128, _round_up(pl.cdiv(B, n_cores), 128))
    n_tiles = pl.cdiv(B, tile_b)
    B_pad = n_tiles * tile_b

    # Only per-call data prep: pad + transpose x so batch rides the lane axis.
    xT = jnp.zeros((in_dim, B_pad), f32).at[:, :B].set(x.T.astype(f32))

    kernel = _make_mine_kernel(
        _elu1_in_bf16() and packed["w2"].dtype == jnp.bfloat16)

    out3 = pl.pallas_call(
        kernel,
        out_shape=jax.ShapeDtypeStruct((n_tiles, 1, tile_b), f32),
        grid_spec=pltpu.PrefetchScalarGridSpec(
            num_scalar_prefetch=0,
            grid=(n_tiles,),
            in_specs=[
                pl.BlockSpec((in_dim, tile_b), lambda i: (0, i)),  # x tile (batch on lanes)
                pl.BlockSpec((H, in_dim), lambda i: (0, 0)),       # W1^T (resident)
                pl.BlockSpec((H, 1), lambda i: (0, 0)),            # b1
                pl.BlockSpec((H, H), lambda i: (0, 0)),            # W2^T (resident)
                pl.BlockSpec((H, 1), lambda i: (0, 0)),            # b2
                pl.BlockSpec((H, 1), lambda i: (0, 0)),            # w3 column
                pl.BlockSpec((1, 1), lambda i: (0, 0)),            # b3
            ],
            out_specs=pl.BlockSpec((1, 1, tile_b), lambda i: (i, 0, 0)),
        ),
        compiler_params=pltpu.CompilerParams(
            dimension_semantics=("parallel",),
        ),
    )(xT, packed["w1"], packed["b1"], packed["w2"], packed["b2"],
      packed["w3"], packed["b3"])

    # (n_tiles, 1, tile_b) row-major flatten == original batch order.
    return out3.reshape(B_pad, 1)[:B]


def init_params(key, input_size=2, hidden_size=100):
    # Matches the PyTorch module: weights ~ N(0, 0.02), biases = 0.
    # (Weights stored as [in_features, out_features].)
    k1, k2, k3 = jax.random.split(key, 3)
    w1 = jax.random.normal(k1, (input_size, hidden_size), jnp.float32) * 0.02
    w2 = jax.random.normal(k2, (hidden_size, hidden_size), jnp.float32) * 0.02
    w3 = jax.random.normal(k3, (hidden_size, 1), jnp.float32) * 0.02
    return {
        "w1": w1, "b1": jnp.zeros((1, hidden_size), jnp.float32),
        "w2": w2, "b2": jnp.zeros((1, hidden_size), jnp.float32),
        "w3": w3, "b3": jnp.zeros((1, 1), jnp.float32),
    }


def reference_forward(x, p):
    h1 = _elu(x @ p["w1"] + p["b1"])
    h2 = _elu(h1 @ p["w2"] + p["b2"])
    return h2 @ p["w3"] + p["b3"]


if __name__ == "__main__":
    key = jax.random.PRNGKey(0)
    kx, kp = jax.random.split(key)

    # Small shapes; batch=500 deliberately not a tile multiple to exercise the
    # pad-and-slice path.
    batch, input_size, hidden_size = 500, 2, 100
    x = jax.random.normal(kx, (batch, input_size), jnp.float32)
    params = init_params(kp, input_size=input_size, hidden_size=hidden_size)

    # One-time weight packing (hoisted out of the per-call path).
    packed = prepare_params(params, use_bf16=True)

    out = mine_net_forward(x, packed, tile_b=4096)
    out = jax.block_until_ready(out)

    ref = reference_forward(x, params)
    assert out.shape == (batch, 1)
    # bf16-fed middle matmul (+ bf16 ELU1 on v6e/v7x) -> loosened tolerance.
    assert jnp.allclose(out, ref, atol=3e-4, rtol=2e-2), "mismatch vs reference"

    print("KERNEL_OK")
</pallas_src>

<mosaic_0001>
module attributes {stable_mosaic.version = 11 : i64} {
  func.func @mine_kernel(%arg0: i32, %arg1: memref<2x512xf32, #tpu.memory_space<vmem>>, %arg2: memref<128x2xf32, #tpu.memory_space<vmem>>, %arg3: memref<128x1xf32, #tpu.memory_space<vmem>>, %arg4: memref<128x128xbf16, #tpu.memory_space<vmem>>, %arg5: memref<128x1xf32, #tpu.memory_space<vmem>>, %arg6: memref<128x1xf32, #tpu.memory_space<vmem>>, %arg7: memref<1x1xf32, #tpu.memory_space<vmem>>, %arg8: memref<1x1x512xf32, #tpu.memory_space<vmem>>) attributes {dimension_semantics = [#tpu.dimension_semantics<parallel>], iteration_bounds = array<i64: 1>, scalar_prefetch = 0 : i64, scratch_operands = 0 : i64, tpu.core_type = #tpu.core_type<tc>, window_params = [{transform_indices = @transform_0, window_bounds = array<i64: 2, 512>}, {pipeline_mode = #tpu.pipeline_mode<synchronous>, transform_indices = @transform_1, window_bounds = array<i64: 128, 2>}, {pipeline_mode = #tpu.pipeline_mode<synchronous>, transform_indices = @transform_2, window_bounds = array<i64: 128, 1>}, {pipeline_mode = #tpu.pipeline_mode<synchronous>, transform_indices = @transform_3, window_bounds = array<i64: 128, 128>}, {pipeline_mode = #tpu.pipeline_mode<synchronous>, transform_indices = @transform_4, window_bounds = array<i64: 128, 1>}, {pipeline_mode = #tpu.pipeline_mode<synchronous>, transform_indices = @transform_5, window_bounds = array<i64: 128, 1>}, {pipeline_mode = #tpu.pipeline_mode<synchronous>, transform_indices = @transform_6, window_bounds = array<i64: 1, 1>}, {transform_indices = @transform_7, window_bounds = array<i64: 1, 1, 512>}]} {
    %c0 = arith.constant 0 : index
    %c0_0 = arith.constant 0 : index
    %0 = vector.load %arg1[%c0, %c0_0] : memref<2x512xf32, #tpu.memory_space<vmem>>, vector<2x512xf32>
    %c0_1 = arith.constant 0 : index
    %c0_2 = arith.constant 0 : index
    %1 = vector.load %arg2[%c0_1, %c0_2] : memref<128x2xf32, #tpu.memory_space<vmem>>, vector<128x2xf32>
    %c0_3 = arith.constant 0 : index
    %c0_4 = arith.constant 0 : index
    %2 = vector.load %arg3[%c0_3, %c0_4] : memref<128x1xf32, #tpu.memory_space<vmem>>, vector<128x1xf32>
    %3 = vector.extract_strided_slice %1 {offsets = [0, 0], sizes = [128, 1], strides = [1, 1]} : vector<128x2xf32> to vector<128x1xf32>
    %4 = vector.extract_strided_slice %0 {offsets = [0, 0], sizes = [1, 512], strides = [1, 1]} : vector<2x512xf32> to vector<1x512xf32>
    %5 = vector.broadcast %3 : vector<128x1xf32> to vector<128x512xf32>
    %6 = vector.broadcast %4 : vector<1x512xf32> to vector<128x512xf32>
    %7 = arith.mulf %5, %6 : vector<128x512xf32>
    %8 = vector.broadcast %2 : vector<128x1xf32> to vector<128x512xf32>
    %9 = arith.addf %8, %7 : vector<128x512xf32>
    %10 = vector.extract_strided_slice %1 {offsets = [0, 1], sizes = [128, 1], strides = [1, 1]} : vector<128x2xf32> to vector<128x1xf32>
    %11 = vector.extract_strided_slice %0 {offsets = [1, 0], sizes = [1, 512], strides = [1, 1]} : vector<2x512xf32> to vector<1x512xf32>
    %12 = vector.broadcast %10 : vector<128x1xf32> to vector<128x512xf32>
    %13 = vector.broadcast %11 : vector<1x512xf32> to vector<128x512xf32>
    %14 = arith.mulf %12, %13 : vector<128x512xf32>
    %15 = arith.addf %9, %14 : vector<128x512xf32>
    %c0_5 = arith.constant 0 : index
    %c0_6 = arith.constant 0 : index
    %16 = vector.load %arg4[%c0_5, %c0_6] : memref<128x128xbf16, #tpu.memory_space<vmem>>, vector<128x128xbf16>
    %cst = arith.constant 0.000000e+00 : f32
    %17 = vector.broadcast %cst : f32 to vector<128x512xf32>
    %18 = arith.cmpf ogt, %15, %17 : vector<128x512xf32>
    %19 = math.exp %15 : vector<128x512xf32>
    %cst_7 = arith.constant 1.000000e+00 : f32
    %20 = vector.broadcast %cst_7 : f32 to vector<128x512xf32>
    %21 = arith.subf %19, %20 : vector<128x512xf32>
    %22 = arith.select %18, %15, %21 : vector<128x512xi1>, vector<128x512xf32>
    %23 = arith.truncf %22 : vector<128x512xf32> to vector<128x512xbf16>
    %cst_8 = arith.constant dense<0.000000e+00> : vector<128x512xf32>
    %24 = tpu.matmul %16, %23, %cst_8 {dimension_numbers = #tpu.dot_dimension_numbers<[1], [0], [0], [1], [0, 0, 1, 1], [], []>} : vector<128x128xbf16>, vector<128x512xbf16>, vector<128x512xf32> -> vector<128x512xf32>
    %c0_9 = arith.constant 0 : index
    %c0_10 = arith.constant 0 : index
    %25 = vector.load %arg5[%c0_9, %c0_10] : memref<128x1xf32, #tpu.memory_space<vmem>>, vector<128x1xf32>
    %26 = vector.broadcast %25 : vector<128x1xf32> to vector<128x512xf32>
    %27 = arith.addf %24, %26 : vector<128x512xf32>
    %cst_11 = arith.constant 0.000000e+00 : f32
    %28 = vector.broadcast %cst_11 : f32 to vector<128x512xf32>
    %29 = arith.cmpf ogt, %27, %28 : vector<128x512xf32>
    %30 = math.exp %27 : vector<128x512xf32>
    %cst_12 = arith.constant 1.000000e+00 : f32
    %31 = vector.broadcast %cst_12 : f32 to vector<128x512xf32>
    %32 = arith.subf %30, %31 : vector<128x512xf32>
    %33 = arith.select %29, %27, %32 : vector<128x512xi1>, vector<128x512xf32>
    %c0_13 = arith.constant 0 : index
    %c0_14 = arith.constant 0 : index
    %34 = vector.load %arg6[%c0_13, %c0_14] : memref<128x1xf32, #tpu.memory_space<vmem>>, vector<128x1xf32>
    %35 = vector.broadcast %34 : vector<128x1xf32> to vector<128x512xf32>
    %36 = arith.mulf %33, %35 : vector<128x512xf32>
    %cst_15 = arith.constant dense<0.000000e+00> : vector<512xf32>
    %37 = vector.multi_reduction <add>, %36, %cst_15 [0] : vector<128x512xf32> to vector<512xf32>
    %38 = vector.shape_cast %37 : vector<512xf32> to vector<1x512xf32>
    %c0_16 = arith.constant 0 : index
    %c0_17 = arith.constant 0 : index
    %39 = vector.load %arg7[%c0_16, %c0_17] : memref<1x1xf32, #tpu.memory_space<vmem>>, vector<1x1xf32>
    %40 = vector.broadcast %39 : vector<1x1xf32> to vector<1x512xf32>
    %41 = arith.addf %38, %40 : vector<1x512xf32>
    %c0_18 = arith.constant 0 : index
    %c0_19 = arith.constant 0 : index
    %c0_20 = arith.constant 0 : index
    %42 = vector.load %arg8[%c0_18, %c0_19, %c0_20] : memref<1x1x512xf32, #tpu.memory_space<vmem>>, vector<1x1x512xf32>
    %43 = vector.shape_cast %42 : vector<1x1x512xf32> to vector<1x512xf32>
    %44 = vector.shape_cast %41 : vector<1x512xf32> to vector<1x1x512xf32>
    tpu.vector_store %arg8[%c0_18, %c0_19, %c0_20], %44 {strides = array<i32>} : memref<1x1x512xf32, #tpu.memory_space<vmem>>, vector<1x1x512xf32>,
    return
  }
  func.func @transform_0(%arg0: i32) -> (i32, i32) {
    %c0_i32 = arith.constant 0 : i32
    %c0_i32_0 = arith.constant 0 : i32
    return %c0_i32, %arg0 : i32, i32
  }
  func.func @transform_1(%arg0: i32) -> (i32, i32) {
    %c0_i32 = arith.constant 0 : i32
    %c0_i32_0 = arith.constant 0 : i32
    %c0_i32_1 = arith.constant 0 : i32
    return %c0_i32, %c0_i32_0 : i32, i32
  }
  func.func @transform_2(%arg0: i32) -> (i32, i32) {
    %c0_i32 = arith.constant 0 : i32
    %c0_i32_0 = arith.constant 0 : i32
    %c0_i32_1 = arith.constant 0 : i32
    return %c0_i32, %c0_i32_0 : i32, i32
  }
  func.func @transform_3(%arg0: i32) -> (i32, i32) {
    %c0_i32 = arith.constant 0 : i32
    %c0_i32_0 = arith.constant 0 : i32
    %c0_i32_1 = arith.constant 0 : i32
    return %c0_i32, %c0_i32_0 : i32, i32
  }
  func.func @transform_4(%arg0: i32) -> (i32, i32) {
    %c0_i32 = arith.constant 0 : i32
    %c0_i32_0 = arith.constant 0 : i32
    %c0_i32_1 = arith.constant 0 : i32
    return %c0_i32, %c0_i32_0 : i32, i32
  }
  func.func @transform_5(%arg0: i32) -> (i32, i32) {
    %c0_i32 = arith.constant 0 : i32
    %c0_i32_0 = arith.constant 0 : i32
    %c0_i32_1 = arith.constant 0 : i32
    return %c0_i32, %c0_i32_0 : i32, i32
  }
  func.func @transform_6(%arg0: i32) -> (i32, i32) {
    %c0_i32 = arith.constant 0 : i32
    %c0_i32_0 = arith.constant 0 : i32
    %c0_i32_1 = arith.constant 0 : i32
    return %c0_i32, %c0_i32_0 : i32, i32
  }
  func.func @transform_7(%arg0: i32) -> (i32, i32, i32) {
    %c0_i32 = arith.constant 0 : i32
    %c0_i32_0 = arith.constant 0 : i32
    %c0_i32_1 = arith.constant 0 : i32
    return %arg0, %c0_i32, %c0_i32_0 : i32, i32, i32
  }
}

</mosaic_0001>

<bundles_post_ra>
// kernel: tpu_custom_call.1
= control target key start
LH: loop header
LB: loop body
LE: loop exit
PB: predicated region body
PF: predicated region fallthrough
CT: control target
= control target key end

     0   :  { %s4175_s0 = inlined_call_operand.vmem [shape: f32[2,512], index: 0, kind: input, shape index: {}]   ;;  %s4176_s1 = inlined_call_operand.vmem [shape: f32[128,2], index: 1, kind: input, shape index: {}]   ;;  %s4177_s2 = inlined_call_operand.vmem [shape: f32[128,1], index: 2, kind: input, shape index: {}]   ;;  %s4178_s3 = inlined_call_operand.vmem [shape: bf16[128,128], index: 3, kind: input, shape index: {}]   ;;  %s4179_s4 = inlined_call_operand.vmem [shape: f32[128,1], index: 4, kind: input, shape index: {}]   ;;  %s4180_s5 = inlined_call_operand.vmem [shape: f32[128,1], index: 5, kind: input, shape index: {}]   ;;  %s4181_s6 = inlined_call_operand.<no memory space> [shape: f32[1,1], index: 6, kind: input, shape index: {}]   ;;  %s4182_s7 = inlined_call_operand.hbm [shape: f32[1,1,512], index: 7, kind: output, shape index: {}]  }
   0x1   :  { %v12_v0 = vstv %s4181_s6 }
   0x2   :  { %13 = vst [vmem:[#allocation2] sm:$0x1] %v12_v0 }
   0x3   :  { %v61_v1 = vld [vmem:[%s4177_s2 + $0x70] sm:$0xff]  ;;  %v4184_v3 = vmov 0   ;;  %v62_v4 = vld [vmem:[%s4177_s2 + $0x78] sm:$0xff]  ;;  %v44_v6 = vld [vmem:[%s4176_s1 + $0x68] sm:$0xff]  ;;  %v2427_v7 = vmov 1  }
   0x4   :  { %v45_v2 = vld [vmem:[%s4176_s1 + $0x70] sm:$0xff]  ;;  %2121 = vset.pattern.permute.xlu1 %v4184_v3  ;;  %2120 = vset.pattern.permute.xlu0 %v4184_v3  ;;  %v46_v5 = vld [vmem:[%s4176_s1 + $0x78] sm:$0xff]  ;;  %v43_v9 = vld [vmem:[%s4176_s1 + $0x60] sm:$0xff] }
   0x5   :  { %316 = vperm.xlu1 %2121, %v61_v1   ;;  %135 = vperm.xlu0 %2120, %v45_v2   ;;  %v42_v8 = vld [vmem:[%s4176_s1 + $0x58] sm:$0xff]  ;;  %v40_v10 = vld [vmem:[%s4176_s1 + $0x48] sm:$0xff] }
   0x6   :  { %1160 = vmatprep.mubr.bf16.mxu0 %v4184_v3  ;;  %1273 = vmatprep.mubr.bf16.mxu1 %v4184_v3 }
   0x9   :  { %321 = vperm.xlu1 %2121, %v62_v4   ;;  %140 = vperm.xlu0 %2120, %v46_v5  }
   0xd   :  { %2122 = vset.pattern.permute.xlu1 %v2427_v7  ;;  %130 = vperm.xlu0 %2120, %v44_v6  }
   0xe   :  { %449 = vperm.xlu1 %2122, %v46_v5  }
  0x11   :  { %120 = vperm.xlu0 %2120, %v42_v8  }
  0x12   :  { %2123 = vset.pattern.permute.xlu1 %v4184_v3 }
  0x13   :  { %125 = vperm.xlu1 %2123, %v43_v9  }
  0x14   :  { %14 = vsyncpa [#allocation4], 0  ;;  %v59_v11 = vld [vmem:[%s4177_s2 + $0x60] sm:$0xff]  ;;  %v38_v12 = vld [vmem:[%s4176_s1 + $0x38] sm:$0xff]  ;;  %v4183_v33 = vlaneseq }
  0x15   :  { %110 = vperm.xlu0 %2120, %v40_v10   ;;  %v60_v13 = vld [vmem:[%s4177_s2 + $0x68] sm:$0xff]  ;;  %v34_v15 = vld [vmem:[%s4176_s1 + $0x18] sm:$0xff]  ;;  %v41_v16 = vld [vmem:[%s4176_s1 + $0x50] sm:$0xff] }
  0x16   :  { %v36_v14 = vld [vmem:[%s4176_s1 + $0x28] sm:$0xff]  ;;  %v57_v18 = vld [vmem:[%s4177_s2 + $0x50] sm:$0xff]  ;;  %v58_v19 = vld [vmem:[%s4177_s2 + $0x58] sm:$0xff]  ;;  %v2585_v34 = vshrl.u32 %v4183_v33, 7 }
  0x17   :  { %306 = vperm.xlu1 %2123, %v59_v11   ;;  %v2525_v17 = vld [vmem:[%s4176_s1 + $0x8] sm:$0xff]  ;;  %v39_v20 = vld [vmem:[%s4176_s1 + $0x40] sm:$0xff]  ;;  %v37_v22 = vld [vmem:[%s4176_s1 + $0x30] sm:$0xff] }
  0x18   :  { %v55_v21 = vld [vmem:[%s4177_s2 + $0x40] sm:$0xff]  ;;  %v56_v23 = vld [vmem:[%s4177_s2 + $0x48] sm:$0xff]  ;;  %v33_v25 = vld [vmem:[%s4176_s1 + $0x10] sm:$0xff]  ;;  %4197 = vst [vmem:[#allocation6_spill] sm:$0xff] %v2585_v34  ;;  %v150_v35 = vsub.s32 2, %v2585_v34  ;;  %v158_v36 = vsub.s32 6, %v2585_v34 }
  0x19   :  { %100 = vperm.xlu0 %2120, %v38_v12   ;;  %v35_v24 = vld [vmem:[%s4176_s1 + $0x20] sm:$0xff]  ;;  %v53_v27 = vld [vmem:[%s4177_s2 + $0x30] sm:$0xff]  ;;  %v54_v28 = vld [vmem:[%s4177_s2 + $0x38] sm:$0xff]  ;;  %v2594_v38 = vsub.s32 0, %v2585_v34  ;;  %v154_v39 = vsub.s32 4, %v2585_v34  ;;  %v454_v40 = vsub.s32 1, %v2585_v34 }
  0x1a   :  { %v31_v26 = vld [vmem:[%s4176_s1] sm:$0xff]  ;;  %v52_v30 = vld [vmem:[%s4177_s2 + $0x28] sm:$0xff]  ;;  %v49_v31 = vld [vmem:[%s4177_s2 + $0x10] sm:$0xff]  ;;  %v458_v41 = vsub.s32 3, %v2585_v34  ;;  %v462_v42 = vsub.s32 5, %v2585_v34  ;;  %v466_v43 = vsub.s32 7, %v2585_v34 }
  0x1b   :  { %311 = vperm.xlu1 %2123, %v60_v13   ;;  %v51_v29 = vld [vmem:[%s4177_s2 + $0x20] sm:$0xff]  ;;  %v50_v32 = vld [vmem:[%s4177_s2 + $0x18] sm:$0xff]  ;;  %4198 = vst [vmem:[#allocation7_spill] sm:$0xff] %v2594_v38  ;;  %v48_v59 = vld [vmem:[%s4177_s2 + $0x8] sm:$0xff] }
  0x1c   :  { %v30_v37 = vld [vmem:[%s4175_s0] sm:$0xff] }
  0x1d   :  { %90 = vperm.xlu0 %2120, %v36_v14   ;;  %v151_v44 = vrot.slane %v30_v37, %v150_v35  ;;  %v159_v45 = vrot.slane %v30_v37, %v158_v36  ;;  %v47_v48 = vld [vmem:[%s4177_s2] sm:$0xff]  ;;  %v147_v49 = vrot.slane %v30_v37, %v2594_v38  ;;  %v155_v50 = vrot.slane %v30_v37, %v154_v39 }
  0x1e   :  { %v455_v51 = vrot.slane %v30_v37, %v454_v40  ;;  %v459_v52 = vrot.slane %v30_v37, %v458_v41  ;;  %v463_v53 = vrot.slane %v30_v37, %v462_v42  ;;  %v467_v54 = vrot.slane %v30_v37, %v466_v43 }
  0x1f   :  { %2124 = vset.pattern.permute.xlu1 %v2427_v7  ;;  %v2609_v55 = vrot.slane %v151_v44, %v2594_v38  ;;  %v2612_v56 = vrot.slane %v159_v45, %v2594_v38  ;;  %v2618_v60 = vrot.slane %v147_v49, %v2594_v38  ;;  %v2621_v61 = vrot.slane %v155_v50, %v2594_v38 }
  0x20   :  { %441 = vperm.xlu1 %2124, %v44_v6   ;;  %v2625_v0 = vrot.slane %v455_v51, %v454_v40  ;;  %v2627_v1 = vrot.slane %v459_v52, %v454_v40  ;;  %v2631_v4 = vrot.slane %v467_v54, %v454_v40 }
  0x21   :  { %80 = vperm.xlu0 %2120, %v34_v15  }
  0x24   :  { %2125 = vset.pattern.permute.xlu1 %v4184_v3 }
  0x25   :  { %115 = vperm.xlu1 %2125, %v41_v16   ;;  %70 = vperm.xlu0 %2120, %v2525_v17  }
  0x29   :  { %296 = vperm.xlu1 %2125, %v57_v18   ;;  %2136 = vset.pattern.permute.xlu0 %v2427_v7 }
  0x2a   :  { %445 = vperm.xlu0 %2136, %v45_v2   ;;  %v2629_v2 = vrot.slane %v463_v53, %v454_v40 }
  0x2d   :  { %301 = vperm.xlu1 %2125, %v58_v19  }
  0x2e   :  { %437 = vperm.xlu0 %2136, %v43_v9  }
  0x31   :  { %2126 = vset.pattern.permute.xlu1 %v2427_v7 }
  0x32   :  { %433 = vperm.xlu1 %2126, %v42_v8   ;;  %429 = vperm.xlu0 %2136, %v41_v16  }
  0x36   :  { %2127 = vset.pattern.permute.xlu1 %v4184_v3  ;;  %421 = vperm.xlu0 %2136, %v39_v20  }
  0x37   :  { %105 = vperm.xlu1 %2127, %v39_v20  }
  0x3a   :  { %413 = vperm.xlu0 %2136, %v37_v22  }
  0x3b   :  { %286 = vperm.xlu1 %2127, %v55_v21  }
  0x3e   :  { %405 = vperm.xlu0 %2136, %v35_v24  }
  0x3f   :  { %291 = vperm.xlu1 %2127, %v56_v23  }
  0x42   :  { %397 = vperm.xlu0 %2136, %v33_v25  }
  0x43   :  { %2128 = vset.pattern.permute.xlu1 %v2427_v7 }
  0x44   :  { %425 = vperm.xlu1 %2128, %v40_v10  }
  0x46   :  { %389 = vperm.xlu0 %2136, %v31_v26  }
  0x48   :  { %2129 = vset.pattern.permute.xlu1 %v4184_v3 }
  0x49   :  { %95 = vperm.xlu1 %2129, %v37_v22  }
  0x4a   :  { %2139 = vset.pattern.permute.xlu0 %v4184_v3 }
  0x4d   :  { %276 = vperm.xlu1 %2129, %v53_v27  }
  0x51   :  { %281 = vperm.xlu1 %2129, %v54_v28  }
  0x55   :  { %2130 = vset.pattern.permute.xlu1 %v2427_v7 }
  0x56   :  { %417 = vperm.xlu1 %2130, %v38_v12  }
  0x5a   :  { %2131 = vset.pattern.permute.xlu1 %v4184_v3 }
  0x5b   :  { %85 = vperm.xlu1 %2131, %v35_v24  }
  0x5f   :  { %266 = vperm.xlu1 %2131, %v51_v29  }
  0x63   :  { %271 = vperm.xlu1 %2131, %v52_v30  }
  0x67   :  { %2132 = vset.pattern.permute.xlu1 %v2427_v7 }
  0x68   :  { %409 = vperm.xlu1 %2132, %v36_v14  }
  0x6c   :  { %2133 = vset.pattern.permute.xlu1 %v4184_v3 }
  0x6d   :  { %75 = vperm.xlu1 %2133, %v33_v25  }
  0x71   :  { %256 = vperm.xlu1 %2133, %v49_v31  }
  0x75   :  { %261 = vperm.xlu1 %2133, %v50_v32  }
  0x79   :  { %2134 = vset.pattern.permute.xlu1 %v2427_v7 }
  0x7a   :  { %401 = vperm.xlu1 %2134, %v34_v15  }
  0x7e   :  { %2135 = vset.pattern.permute.xlu1 %v4184_v3 }
  0x7f   :  { %65 = vperm.xlu1 %2135, %v31_v26  }
  0x80   :  { %v2602_v46 = vpop.permute.xlu1 %316  ;;  %v136_v47 = vpop.permute.xlu0 %135 }
  0x81   :  { %v236_v26 = vmul.f32 %v2618_v60, %v136_v47  ;;  %v238_v28 = vmul.f32 %v2621_v61, %v136_v47  ;;  %v239_v30 = vmul.f32 %v2612_v56, %v136_v47 }
  0x83   :  { %246 = vperm.xlu1 %2135, %v47_v48   ;;  %v2659_v36 = vadd.f32 %v2602_v46, %v236_v26  ;;  %v2662_v37 = vadd.f32 %v2602_v46, %v238_v28  ;;  %v2670_v43 = vadd.f32 %v2602_v46, %v239_v30 }
  0x84   :  { %v322_v57 = vpop.permute.xlu1 %321  ;;  %v141_v58 = vpop.permute.xlu0 %140 }
  0x85   :  { %v241_v62 = vmul.f32 %v2609_v55, %v141_v58  ;;  %v243_v63 = vmul.f32 %v2612_v56, %v141_v58  ;;  %v240_v5 = vmul.f32 %v2618_v60, %v141_v58  ;;  %v242_v6 = vmul.f32 %v2621_v61, %v141_v58 }
  0x87   :  { %251 = vperm.xlu1 %2135, %v48_v59   ;;  %v385_v10 = vadd.f32 %v322_v57, %v241_v62  ;;  %v387_v11 = vadd.f32 %v322_v57, %v243_v63  ;;  %v384_v16 = vadd.f32 %v322_v57, %v240_v5  ;;  %v386_v18 = vadd.f32 %v322_v57, %v242_v6 }
  0x88   :  { %v131_v8 = vpop.permute.xlu0 %130 }
  0x89   :  { %v450_v9 = vpop.permute.xlu1 %449  ;;  %v232_v40 = vmul.f32 %v2618_v60, %v131_v8  ;;  %v233_v41 = vmul.f32 %v2609_v55, %v131_v8  ;;  %v234_v44 = vmul.f32 %v2621_v61, %v131_v8  ;;  %v235_v45 = vmul.f32 %v2612_v56, %v131_v8 }
  0x8a   :  { %v548_v12 = vmul.f32 %v2625_v0, %v450_v9  ;;  %v549_v13 = vmul.f32 %v2627_v1, %v450_v9  ;;  %v550_v14 = vmul.f32 %v2629_v2, %v450_v9  ;;  %v551_v15 = vmul.f32 %v2631_v4, %v450_v9 }
  0x8b   :  { %2137 = vset.pattern.permute.xlu1 %v2427_v7 }
  0x8c   :  { %393 = vperm.xlu1 %2137, %v2525_v17   ;;  %v121_v19 = vpop.permute.xlu0 %120  ;;  %v2641_v20 = vadd.f32 %v549_v13, %v385_v10  ;;  %v2643_v21 = vadd.f32 %v551_v15, %v387_v11  ;;  %v2645_v22 = vadd.f32 %v548_v12, %v384_v16  ;;  %v2648_v25 = vadd.f32 %v550_v14, %v386_v18 }
  0x8d   :  { %v237_v17 = vmul.f32 %v2609_v55, %v136_v47  ;;  %v2675_v47 = vmul.f32 %v2618_v60, %v121_v19  ;;  %v2678_v48 = vmul.f32 %v2609_v55, %v121_v19  ;;  %v2681_v49 = vmul.f32 %v2621_v61, %v121_v19 }
  0x8e   :  { %v126_v23 = vpop.permute.xlu1 %125  ;;  %v818_v24 = vmul.f32 1.442695, %v2641_v20  ;;  %v822_v7 = vmul.f32 1.442695, %v2643_v21  ;;  %v816_v29 = vmul.f32 1.442695, %v2645_v22  ;;  %v2684_v50 = vmul.f32 %v2612_v56, %v121_v19 }
  0x8f   :  { %v820_v32 = vmul.f32 1.442695, %v2648_v25  ;;  %v2665_v39 = vadd.f32 %v2602_v46, %v237_v17  ;;  %v228_v46 = vmul.f32 %v2618_v60, %v126_v23  ;;  %v229_v51 = vmul.f32 %v2609_v55, %v126_v23 }
  0x90   :  { %v111_v27 = vpop.permute.xlu0 %110  ;;  %2138 = vset.pattern.permute.xlu1 %v4184_v3  ;;  %2148 = vpow2.f32 %v818_v24  ;;  %v230_v53 = vmul.f32 %v2621_v61, %v126_v23  ;;  %v231_v54 = vmul.f32 %v2612_v56, %v126_v23  ;;  %vm693_vm0 = vcmp.gt.f32.partialorder %v2641_v20, 0.0 }
  0x91   :  { %2150 = vpow2.f32 %v822_v7  ;;  %v2691_v57 = vmul.f32 %v2618_v60, %v111_v27  ;;  %v2694_v58 = vmul.f32 %v2609_v55, %v111_v27  ;;  %v2697_v59 = vmul.f32 %v2621_v61, %v111_v27 }
  0x92   :  { %v307_v31 = vpop.permute.xlu1 %306  ;;  %2152 = vpow2.f32 %v816_v29  ;;  %v2700_v62 = vmul.f32 %v2612_v56, %v111_v27  ;;  %vm695_vm1 = vcmp.gt.f32.partialorder %v2643_v21, 0.0  ;;  %vm692_vm2 = vcmp.gt.f32.partialorder %v2645_v22, 0.0 }
  0x93   :  { %2154 = vpow2.f32 %v820_v32  ;;  %v2702_v63 = vadd.f32 %v307_v31, %v228_v46  ;;  %v2704_v5 = vadd.f32 %v307_v31, %v229_v51  ;;  %v2711_v18 = vadd.f32 %v307_v31, %v230_v53 }
  0x94   :  { %v101_v35 = vpop.permute.xlu0 %100  ;;  %v2713_v19 = vadd.f32 %v307_v31, %v231_v54  ;;  %vm694_vm3 = vcmp.gt.f32.partialorder %v2648_v25, 0.0 }
  0x95   :  { %v2716_v23 = vmul.f32 %v2618_v60, %v101_v35  ;;  %v2719_v24 = vmul.f32 %v2609_v55, %v101_v35  ;;  %v2730_v29 = vmul.f32 %v2621_v61, %v101_v35  ;;  %v2733_v30 = vmul.f32 %v2612_v56, %v101_v35 }
  0x96   :  { %v312_v42 = vpop.permute.xlu1 %311 }
  0x97   :  { %v376_v6 = vadd.f32 %v312_v42, %v232_v40  ;;  %v377_v8 = vadd.f32 %v312_v42, %v233_v41  ;;  %v378_v9 = vadd.f32 %v312_v42, %v234_v44  ;;  %v379_v10 = vadd.f32 %v312_v42, %v235_v45  ;;  %4199 = vst [vmem:[#allocation8_spill] sm:$0xff] %v2719_v24 }
  0x98   :  { %v91_v52 = vpop.permute.xlu0 %90  ;;  %4200 = vst [vmem:[#allocation9_spill] sm:$0xff] %v2730_v29  ;;  %4201 = vst [vmem:[#allocation10_spill] sm:$0xff] %v2733_v30 }
  0x99   :  { %v2736_v31 = vmul.f32 %v2618_v60, %v91_v52  ;;  %v2739_v32 = vmul.f32 %v2609_v55, %v91_v52  ;;  %v2743_v40 = vmul.f32 %v2621_v61, %v91_v52  ;;  %v2746_v41 = vmul.f32 %v2612_v56, %v91_v52 }
  0x9b   :  { %v442_v11 = vpop.permute.xlu1 %441  ;;  %4202 = vst [vmem:[#allocation11_spill] sm:$0xff] %v2736_v31  ;;  %4203 = vst [vmem:[#allocation12_spill] sm:$0xff] %v2739_v32 }
  0x9c   :  { %v540_v12 = vmul.f32 %v2625_v0, %v442_v11  ;;  %v541_v13 = vmul.f32 %v2627_v1, %v442_v11  ;;  %v542_v14 = vmul.f32 %v2629_v2, %v442_v11  ;;  %v543_v15 = vmul.f32 %v2631_v4, %v442_v11  ;;  %v81_v16 = vpop.permute.xlu0 %80  ;;  %4204 = vst [vmem:[#allocation13_spill] sm:$0xff] %v2743_v40 }
  0x9d   :  { %v2149_v26 = vpop.eup %2148  ;;  %4205 = vst [vmem:[#allocation14_spill] sm:$0xff] %v2746_v41  ;;  %v2755_v51 = vmul.f32 %v2618_v60, %v81_v16  ;;  %v2758_v53 = vmul.f32 %v2609_v55, %v81_v16  ;;  %v2761_v52 = vmul.f32 %v2621_v61, %v81_v16 }
  0x9e   :  { %v2721_v27 = vadd.f32 %v540_v12, %v376_v6  ;;  %v2723_v7 = vadd.f32 %v541_v13, %v377_v8  ;;  %v2725_v17 = vadd.f32 %v542_v14, %v378_v9  ;;  %v2727_v28 = vadd.f32 %v543_v15, %v379_v10  ;;  %v2151_v46 = vpop.eup %2150 }
  0x9f   :  { %4207 = vst [vmem:[#allocation16_spill] sm:$0xff] %v2755_v51  ;;  %4208 = vst [vmem:[#allocation17_spill] sm:$0xff] %v2758_v53  ;;  %v2041_v54 = vadd.f32 -1.0, %v2149_v26  ;;  %v2153_v6 = vpop.eup %2152  ;;  %v2766_v10 = vmul.f32 %v2612_v56, %v81_v16  ;;  %v2043_v3 = vadd.f32 -1.0, %v2151_v46 }
  0xa0   :  { %v800_v42 = vmul.f32 1.442695, %v2721_v27  ;;  %v802_v44 = vmul.f32 1.442695, %v2723_v7  ;;  %v116_v35 = vpop.permute.xlu1 %115  ;;  %v2750_v45 = vpop.permute.xlu0 %70  ;;  %4209 = vst [vmem:[#allocation18_spill] sm:$0xff] %v2761_v52  ;;  %vm685_vm5 = vcmp.gt.f32.partialorder %v2723_v7, 0.0 }
  0xa1   :  { %4206 = vst [vmem:[#allocation15_spill] sm:$0xff] %v2750_v45  ;;  %v804_v8 = vmul.f32 1.442695, %v2725_v17  ;;  %v806_v9 = vmul.f32 1.442695, %v2727_v28  ;;  %4210 = vst [vmem:[#allocation19_spill] sm:$0xff] %v2766_v10  ;;  %v220_v11 = vmul.f32 %v2618_v60, %v116_v35  ;;  %v2155_v12 = vpop.eup %2154  ;;  %v221_v13 = vmul.f32 %v2609_v55, %v116_v35 }
  0xa2   :  { %2156 = vpow2.f32 %v800_v42  ;;  %v222_v14 = vmul.f32 %v2621_v61, %v116_v35  ;;  %v223_v15 = vmul.f32 %v2612_v56, %v116_v35  ;;  %v2774_v26 = vmul.f32 %v2618_v60, %v2750_v45 }
  0xa3   :  { %2158 = vpow2.f32 %v802_v44  ;;  %v2778_v33 = vmul.f32 %v2609_v55, %v2750_v45  ;;  %v2782_v42 = vmul.f32 %v2621_v61, %v2750_v45  ;;  %v2787_v35 = vsel %vm693_vm0, %v2641_v20, %v2041_v54 }
  0xa4   :  { %4211 = vst [vmem:[#allocation20_spill] sm:$0xff] %v2774_v26  ;;  %v297_v16 = vpop.permute.xlu1 %296  ;;  %v2040_v44 = vadd.f32 -1.0, %v2153_v6  ;;  %v2042_v38 = vadd.f32 -1.0, %v2155_v12  ;;  %2160 = vpow2.f32 %v804_v8  ;;  %v2799_v54 = vsel %vm695_vm1, %v2643_v21, %v2043_v3 }
  0xa5   :  { %4212 = vst [vmem:[#allocation21_spill] sm:$0xff] %v2778_v33  ;;  %4213 = vst [vmem:[#allocation22_spill] sm:$0xff] %v2782_v42  ;;  %v446_v34 = vpop.permute.xlu0 %445  ;;  %2162 = vpow2.f32 %v806_v9  ;;  %v364_v46 = vadd.f32 %v297_v16, %v220_v11  ;;  %v365_v52 = vadd.f32 %v297_v16, %v221_v13  ;;  %v366_v45 = vadd.f32 %v297_v16, %v222_v14 }
  0xa6   :  { %v544_v26 = vmul.f32 %v2625_v0, %v446_v34  ;;  %v545_v10 = vmul.f32 %v2627_v1, %v446_v34  ;;  %v546_v33 = vmul.f32 %v2629_v2, %v446_v34  ;;  %v547_v42 = vmul.f32 %v2631_v4, %v446_v34 }
  0xa7   :  { %v367_v53 = vadd.f32 %v297_v16, %v223_v15  ;;  %v2807_v9 = vsel %vm692_vm2, %v2645_v22, %v2040_v44  ;;  %vm687_vm9 = vcmp.gt.f32.partialorder %v2727_v28, 0.0  ;;  %vm684_vm13 = vcmp.gt.f32.partialorder %v2721_v27, 0.0 }
  0xa8   :  { %v302_v51 = vpop.permute.xlu1 %301  ;;  %v2794_v20 = vadd.f32 %v545_v10, %v2665_v39  ;;  %v2802_v8 = vadd.f32 %v544_v26, %v2659_v36  ;;  %v2810_v34 = vadd.f32 %v546_v33, %v2662_v37  ;;  %v2815_v39 = vsel %vm694_vm3, %v2648_v25, %v2042_v38 }
  0xa9   :  { %v438_v6 = vpop.permute.xlu0 %437  ;;  %v368_v11 = vadd.f32 %v302_v51, %v2675_v47  ;;  %v369_v22 = vadd.f32 %v302_v51, %v2678_v48  ;;  %v2825_v37 = vadd.f32 %v547_v42, %v2670_v43  ;;  %v370_v47 = vadd.f32 %v302_v51, %v2681_v49 }
  0xaa   :  { %v536_v3 = vmul.f32 %v2625_v0, %v438_v6  ;;  %v537_v21 = vmul.f32 %v2627_v1, %v438_v6  ;;  %v538_v36 = vmul.f32 %v2629_v2, %v438_v6  ;;  %v539_v10 = vmul.f32 %v2631_v4, %v438_v6 }
  0xab   :  { %v810_v33 = vmul.f32 1.442695, %v2794_v20  ;;  %v371_v48 = vadd.f32 %v302_v51, %v2684_v50  ;;  %v2842_v43 = vmul.f32 1.442695, %v2825_v37  ;;  %vm689_vm4 = vcmp.gt.f32.partialorder %v2794_v20, 0.0 }
  0xac   :  { %v2828_v38 = vadd.f32 %v536_v3, %v2702_v63  ;;  %v2831_v25 = vadd.f32 %v537_v21, %v2704_v5  ;;  %v2834_v12 = vadd.f32 %v538_v36, %v2711_v18  ;;  %v2837_v13 = vadd.f32 %v539_v10, %v2713_v19 }
  0xad   :  { %v434_v14 = vpop.permute.xlu1 %433  ;;  %v430_v15 = vpop.permute.xlu0 %429  ;;  %2164 = vpow2.f32 %v810_v33  ;;  %vm691_vm7 = vcmp.gt.f32.partialorder %v2825_v37, 0.0  ;;  %vm688_vm10 = vcmp.gt.f32.partialorder %v2802_v8, 0.0  ;;  %vm690_vm12 = vcmp.gt.f32.partialorder %v2810_v34, 0.0 }
  0xae   :  { %v792_v63 = vmul.f32 1.442695, %v2828_v38  ;;  %v794_v5 = vmul.f32 1.442695, %v2831_v25  ;;  %v796_v18 = vmul.f32 1.442695, %v2834_v12  ;;  %v532_v26 = vmul.f32 %v2625_v0, %v434_v14 }
  0xaf   :  { %v798_v19 = vmul.f32 1.442695, %v2837_v13  ;;  %v533_v49 = vmul.f32 %v2627_v1, %v434_v14  ;;  %v534_v50 = vmul.f32 %v2629_v2, %v434_v14  ;;  %v535_v51 = vmul.f32 %v2631_v4, %v434_v14  ;;  %v2852_v16 = vpop.eup %2156 }
  0xb0   :  { %2166 = vpow2.f32 %v792_v63  ;;  %v2854_v42 = vadd.f32 %v532_v26, %v368_v11  ;;  %v528_v44 = vmul.f32 %v2625_v0, %v430_v15  ;;  %v529_v6 = vmul.f32 %v2627_v1, %v430_v15  ;;  %v2858_v3 = vpop.eup %2158 }
  0xb1   :  { %2168 = vpow2.f32 %v794_v5  ;;  %v2860_v21 = vadd.f32 %v533_v49, %v369_v22  ;;  %v2862_v36 = vadd.f32 %v534_v50, %v370_v47  ;;  %v2864_v10 = vadd.f32 %v535_v51, %v371_v48  ;;  %v2869_v26 = vpop.eup %2160  ;;  %v422_v51 = vpop.permute.xlu0 %421 }
  0xb2   :  { %2170 = vpow2.f32 %v796_v18  ;;  %v784_v33 = vmul.f32 1.442695, %v2854_v42  ;;  %v530_v14 = vmul.f32 %v2629_v2, %v430_v15  ;;  %v531_v11 = vmul.f32 %v2631_v4, %v430_v15  ;;  %v106_v63 = vpop.permute.xlu1 %105  ;;  %v2874_v5 = vpop.eup %2162 }
  0xb3   :  { %2172 = vpow2.f32 %v798_v19  ;;  %v786_v41 = vmul.f32 1.442695, %v2860_v21  ;;  %v788_v22 = vmul.f32 1.442695, %v2862_v36  ;;  %v790_v47 = vmul.f32 1.442695, %v2864_v10 }
  0xb4   :  { %2174 = vpow2.f32 %v784_v33  ;;  %v2876_v48 = vadd.f32 %v528_v44, %v364_v46  ;;  %v2878_v18 = vadd.f32 %v529_v6, %v365_v52  ;;  %v2880_v49 = vadd.f32 %v530_v14, %v366_v45 }
  0xb5   :  { %2176 = vpow2.f32 %v786_v41  ;;  %v2882_v15 = vadd.f32 %v531_v11, %v367_v53  ;;  %v212_v19 = vmul.f32 %v2618_v60, %v106_v63  ;;  %v213_v50 = vmul.f32 %v2609_v55, %v106_v63 }
  0xb6   :  { %2178 = vpow2.f32 %v788_v22  ;;  %v776_v40 = vmul.f32 1.442695, %v2876_v48  ;;  %v778_v32 = vmul.f32 1.442695, %v2878_v18  ;;  %v780_v46 = vmul.f32 1.442695, %v2880_v49  ;;  %v287_v44 = vpop.permute.xlu1 %286 }
  0xb7   :  { %2180 = vpow2.f32 %v790_v47  ;;  %v782_v45 = vmul.f32 1.442695, %v2882_v15  ;;  %v214_v41 = vmul.f32 %v2621_v61, %v106_v63  ;;  %v215_v53 = vmul.f32 %v2612_v56, %v106_v63 }
  0xb8   :  { %2182 = vpow2.f32 %v776_v40  ;;  %v356_v52 = vadd.f32 %v287_v44, %v212_v19  ;;  %v357_v6 = vadd.f32 %v287_v44, %v213_v50  ;;  %v520_v33 = vmul.f32 %v2625_v0, %v422_v51 }
  0xb9   :  { %2184 = vpow2.f32 %v778_v32  ;;  %v358_v14 = vadd.f32 %v287_v44, %v214_v41  ;;  %v359_v11 = vadd.f32 %v287_v44, %v215_v53  ;;  %v521_v22 = vmul.f32 %v2627_v1, %v422_v51 }
  0xba   :  { %v2165_v31 = vpop.eup %2164  ;;  %2186 = vpow2.f32 %v780_v46  ;;  %v522_v47 = vmul.f32 %v2629_v2, %v422_v51  ;;  %v523_v30 = vmul.f32 %v2631_v4, %v422_v51  ;;  %v2896_v29 = vadd.f32 %v520_v33, %v356_v52  ;;  %v292_v24 = vpop.permute.xlu1 %291 }
  0xbb   :  { %2188 = vpow2.f32 %v782_v45  ;;  %v2898_v40 = vadd.f32 %v521_v22, %v357_v6  ;;  %v808_v32 = vmul.f32 1.442695, %v2802_v8  ;;  %v360_v46 = vadd.f32 %v292_v24, %v2691_v57 }
  0xbc   :  { %4214 = vst [vmem:[#allocation23_spill] sm:$0xff] %v2896_v29  ;;  %v2902_v63 = vadd.f32 %v522_v47, %v358_v14  ;;  %v2904_v19 = vadd.f32 %v523_v30, %v359_v11  ;;  %v760_v50 = vmul.f32 1.442695, %v2896_v29  ;;  %v361_v45 = vadd.f32 %v292_v24, %v2694_v58 }
  0xbd   :  { %v2909_v51 = vpop.eup %2166  ;;  %v762_v44 = vmul.f32 1.442695, %v2898_v40  ;;  %v2037_v41 = vadd.f32 -1.0, %v2165_v31  ;;  %2190 = vpow2.f32 %v2842_v43  ;;  %v362_v6 = vadd.f32 %v292_v24, %v2697_v59 }
  0xbe   :  { %4215 = vst [vmem:[#allocation24_spill] sm:$0xff] %v2902_v63  ;;  %v2169_v53 = vpop.eup %2168  ;;  %2192 = vpow2.f32 %v760_v50  ;;  %v764_v30 = vmul.f32 1.442695, %v2902_v63  ;;  %v766_v52 = vmul.f32 1.442695, %v2904_v19  ;;  %v363_v33 = vadd.f32 %v292_v24, %v2700_v62  ;;  %v2939_v63 = vpop.permute.xlu0 %413 }
  0xbf   :  { %v2917_v57 = vpop.eup %2170  ;;  %2194 = vpow2.f32 %v762_v44  ;;  %v426_v14 = vpop.permute.xlu1 %425  ;;  %v945_v58 = vsel %vm689_vm4, %v2794_v20, %v2037_v41  ;;  %v812_v31 = vmul.f32 1.442695, %v2810_v34  ;;  %v2029_v50 = vadd.f32 -1.0, %v2169_v53 }
  0xc0   :  { %v2173_v43 = vpop.eup %2172  ;;  %2196 = vpow2.f32 %v764_v30  ;;  %v524_v11 = vmul.f32 %v2625_v0, %v426_v14  ;;  %v525_v22 = vmul.f32 %v2627_v1, %v426_v14  ;;  %v526_v59 = vmul.f32 %v2629_v2, %v426_v14 }
  0xc1   :  { %v2927_v47 = vpop.eup %2174  ;;  %2198 = vpow2.f32 %v766_v52  ;;  %v527_v62 = vmul.f32 %v2631_v4, %v426_v14  ;;  %v981_v24 = vpack.c.bf16 %v2787_v35, %v945_v58  ;;  %v984_v52 = vld [vmem:[%s4179_s4] sm:$0xff]  ;;  %vm681_vm6 = vcmp.gt.f32.partialorder %v2831_v25, 0.0 }
  0xc2   :  { %v2931_v44 = vpop.eup %2176  ;;  %v2933_v20 = vadd.f32 %v524_v11, %v360_v46  ;;  %v2935_v41 = vadd.f32 %v525_v22, %v361_v45  ;;  %v2937_v30 = vadd.f32 %v526_v59, %v362_v6  ;;  %2200 = vpow2.f32 %v808_v32  ;;  %1002 = vperm.xlu1 %2138, %v984_v52  }
  0xc3   :  { %v2944_v29 = vpop.eup %2178  ;;  %v2946_v14 = vadd.f32 %v527_v62, %v363_v33  ;;  %1128 = vmatprep.subr.bf16.mxu0 %v981_v24  ;;  %2202 = vpow2.f32 %v812_v31  ;;  %v2033_v35 = vadd.f32 -1.0, %v2858_v3  ;;  %v2957_v6 = vsel %vm681_vm6, %v2831_v25, %v2029_v50 }
  0xc4   :  { %4216 = vst [vmem:[#allocation25_spill] sm:$0xff] %v2933_v20  ;;  %4217 = vst [vmem:[#allocation26_spill] sm:$0xff] %v2937_v30  ;;  %v2950_v46 = vpop.eup %2180  ;;  %v768_v32 = vmul.f32 1.442695, %v2933_v20  ;;  %v770_v45 = vmul.f32 1.442695, %v2935_v41  ;;  %v96_v33 = vpop.permute.xlu1 %95  ;;  %v2970_v11 = vmul.f32 %v2625_v0, %v2939_v63 }
  0xc5   :  { %v772_v53 = vmul.f32 1.442695, %v2937_v30  ;;  %v2959_v58 = vpop.eup %2182  ;;  %v774_v31 = vmul.f32 1.442695, %v2946_v14  ;;  %v2965_v3 = vsel %vm685_vm5, %v2723_v7, %v2033_v35  ;;  %vm683_vm8 = vcmp.gt.f32.partialorder %v2837_v13, 0.0  ;;  %v987_v30 = vld [vmem:[%s4179_s4 + $0x18] sm:$0xff] }
  0xc6   :  { %v2185_v22 = vpop.eup %2184  ;;  %2204 = vpow2.f32 %v768_v32  ;;  %v2031_v25 = vadd.f32 -1.0, %v2173_v43  ;;  %v2035_v59 = vadd.f32 -1.0, %v2874_v5  ;;  %v204_v24 = vmul.f32 %v2618_v60, %v96_v33 }
  0xc7   :  { %v2974_v62 = vpop.eup %2186  ;;  %2206 = vpow2.f32 %v770_v45  ;;  %v205_v50 = vmul.f32 %v2609_v55, %v96_v33  ;;  %v206_v5 = vmul.f32 %v2621_v61, %v96_v33  ;;  %v207_v7 = vmul.f32 %v2612_v56, %v96_v33 }
  0xc8   :  { %v2189_v52 = vpop.eup %2188  ;;  %2208 = vpow2.f32 %v772_v53  ;;  %v2981_v35 = vsel %vm683_vm8, %v2837_v13, %v2031_v25  ;;  %v2984_v32 = vsel %vm687_vm9, %v2727_v28, %v2035_v59  ;;  %v277_v43 = vpop.permute.xlu1 %276  ;;  %vm680_vm11 = vcmp.gt.f32.partialorder %v2828_v38, 0.0  ;;  %v986_v13 = vld [vmem:[%s4179_s4 + $0x10] sm:$0xff] }
  0xc9   :  { %2210 = vpow2.f32 %v774_v31  ;;  %v2028_v28 = vadd.f32 -1.0, %v2909_v51  ;;  %v2032_v31 = vadd.f32 -1.0, %v2852_v16  ;;  %vm682_vm14 = vcmp.gt.f32.partialorder %v2834_v12, 0.0  ;;  %1012 = vperm.xlu1 %2138, %v986_v13  }
  0xca   :  { %v2191_v53 = vpop.eup %2190  ;;  %vm686_vm15 = vcmp.gt.f32.partialorder %v2725_v17, 0.0  ;;  %v2030_v59 = vadd.f32 -1.0, %v2917_v57  ;;  %v2034_v45 = vadd.f32 -1.0, %v2869_v26  ;;  %vm673_vm0 = vcmp.gt.f32.partialorder %v2878_v18, 0.0 }
  0xcb   :  { %v3000_v25 = vpop.eup %2192  ;;  %v2039_v33 = vadd.f32 -1.0, %v2191_v53  ;;  %v3013_v16 = vsel %vm680_vm11, %v2828_v38, %v2028_v28  ;;  %v3016_v51 = vsel %vm684_vm13, %v2721_v27, %v2032_v31  ;;  %v2021_v13 = vadd.f32 -1.0, %v2185_v22 }
  0xcc   :  { %4218 = vst [vmem:[#allocation27_spill] sm:$0xff] %v3000_v25  ;;  %v3008_v20 = vpop.eup %2194  ;;  %v3019_v57 = vpop.permute.xlu1 %281  ;;  %v3029_v25 = vsel %vm682_vm14, %v2834_v12, %v2030_v59  ;;  %v3032_v38 = vsel %vm686_vm15, %v2725_v17, %v2034_v45  ;;  %vm677_vm1 = vcmp.gt.f32.partialorder %v2860_v21, 0.0  ;;  %v2025_v31 = vadd.f32 -1.0, %v2931_v44 }
  0xcd   :  { %v3021_v26 = vpop.eup %2196  ;;  %v947_v53 = vsel %vm691_vm7, %v2825_v37, %v2039_v33  ;;  %1017 = vperm.xlu1 %2138, %v987_v30   ;;  %v3044_v33 = vsel %vm673_vm0, %v2878_v18, %v2021_v13  ;;  %vm675_vm2 = vcmp.gt.f32.partialorder %v2882_v15, 0.0  ;;  %v2023_v17 = vadd.f32 -1.0, %v2189_v52 }
  0xce   :  { %v3035_v27 = vpop.eup %2198  ;;  %v983_v22 = vpack.c.bf16 %v2799_v54, %v947_v53  ;;  %v2027_v45 = vadd.f32 -1.0, %v2950_v46  ;;  %v933_v53 = vsel %vm677_vm1, %v2860_v21, %v2025_v31  ;;  %vm679_vm3 = vcmp.gt.f32.partialorder %v2864_v10, 0.0  ;;  %v985_v46 = vld [vmem:[%s4179_s4 + $0x8] sm:$0xff] }
  0xcf   :  { %v2201_v12 = vpop.eup %2200  ;;  %v348_v37 = vadd.f32 %v277_v43, %v204_v24  ;;  %v3051_v44 = vsel %vm675_vm2, %v2882_v15, %v2023_v17  ;;  %v349_v30 = vadd.f32 %v277_v43, %v205_v50  ;;  %v989_v21 = vld [vmem:[%s4179_s4 + $0x28] sm:$0xff]  ;;  %v973_v15 = vpack.c.bf16 %v933_v53, %v3044_v33  ;;  %1007 = vperm.xlu0 %2139, %v985_v46  }
  0xd0   :  { %v2203_v59 = vpop.eup %2202  ;;  %1241 = vmatprep.subr.bf16.mxu1 %v983_v22  ;;  %v2036_v54 = vadd.f32 -1.0, %v2201_v12  ;;  %v935_v18 = vsel %vm679_vm3, %v2864_v10, %v2027_v45  ;;  %v350_v52 = vadd.f32 %v277_v43, %v206_v5  ;;  %v351_v22 = vadd.f32 %v277_v43, %v207_v7 }
  0xd1   :  { %v2038_v28 = vadd.f32 -1.0, %v2203_v59  ;;  %v3054_v13 = vpop.permute.xlu1 %417  ;;  %v513_v12 = vmul.f32 %v2627_v1, %v2939_v63  ;;  %v514_v17 = vmul.f32 %v2629_v2, %v2939_v63  ;;  %1027 = vperm.xlu1 %2138, %v989_v21   ;;  %v975_v5 = vpack.c.bf16 %v935_v18, %v3051_v44 }
  0xd2   :  { %v944_v24 = vsel %vm688_vm10, %v2802_v8, %v2036_v54  ;;  %v3083_v43 = vadd.f32 %v2970_v11, %v348_v37  ;;  %vm672_vm4 = vcmp.gt.f32.partialorder %v2876_v48, 0.0  ;;  %v4219_v37 = vpack.c.bf16 %v2965_v3, %v2957_v6 }
  0xd3   :  { %v3066_v10 = vpop.eup %2204  ;;  %v980_v50 = vpack.c.bf16 %v2807_v9, %v944_v24  ;;  %v946_v31 = vsel %vm690_vm12, %v2810_v34, %v2038_v28  ;;  %v515_v9 = vmul.f32 %v2631_v4, %v2939_v63  ;;  %v988_v34 = vld [vmem:[%s4179_s4 + $0x20] sm:$0xff]  ;;  %v3090_v33 = vadd.f32 %v513_v12, %v349_v30  ;;  %v991_v63 = vld [vmem:[%s4179_s4 + $0x38] sm:$0xff] }
  0xd4   :  { %v3076_v8 = vpop.eup %2206  ;;  %v982_v7 = vpack.c.bf16 %v2815_v39, %v946_v31  ;;  %v3092_v45 = vadd.f32 %v514_v17, %v350_v52  ;;  %v2020_v39 = vadd.f32 -1.0, %v2959_v58  ;;  %v744_v54 = vmul.f32 1.442695, %v3083_v43  ;;  %1022 = vperm.xlu0 %2139, %v988_v34   ;;  %v4224_v24 = vld [vmem:[#allocation9_spill] sm:$0xff] }
  0xd5   :  { %v3088_v28 = vpop.eup %2208  ;;  %1129 = vmatpush1.bf16.msra.mxu0 %v980_v50  ;;  %v3104_v59 = vadd.f32 %v515_v9, %v351_v22  ;;  %vm676_vm5 = vcmp.gt.f32.partialorder %v2854_v42, 0.0  ;;  %v2024_v53 = vadd.f32 -1.0, %v2927_v47  ;;  %v4220_v44 = vpack.c.bf16 %v2984_v32, %v2981_v35  ;;  %1037 = vperm.xlu1 %2138, %v991_v63   ;;  %v995_v9 = vld [vmem:[%s4179_s4 + $0x58] sm:$0xff] }
  0xd6   :  { %v3099_v11 = vpop.eup %2210  ;;  %1242 = vmatpush1.bf16.msra.mxu1 %v982_v7  ;;  %1130 = vmatprep.subr.bf16.mxu0 %v4219_v37  ;;  %v86_v58 = vpop.permute.xlu1 %85  ;;  %v746_v18 = vmul.f32 1.442695, %v3090_v33  ;;  %v748_v30 = vmul.f32 1.442695, %v3092_v45  ;;  %v928_v6 = vsel %vm672_vm4, %v2876_v48, %v2020_v39  ;;  %vm674_vm6 = vcmp.gt.f32.partialorder %v2880_v49, 0.0 }
  0xd7   :  { %1243 = vmatprep.subr.bf16.mxu1 %v4220_v44  ;;  %2212 = vpow2.f32 %v744_v54  ;;  %v932_v3 = vsel %vm676_vm5, %v2854_v42, %v2024_v53  ;;  %vm678_vm7 = vcmp.gt.f32.partialorder %v2862_v36, 0.0  ;;  %v2022_v47 = vadd.f32 -1.0, %v2974_v62  ;;  %v990_v42 = vld [vmem:[%s4179_s4 + $0x30] sm:$0xff]  ;;  %v993_v62 = vld [vmem:[%s4179_s4 + $0x48] sm:$0xff] }
  0xd8   :  { %v4221_v35 = vpack.c.bf16 %v3016_v51, %v3013_v16  ;;  %v750_v32 = vmul.f32 1.442695, %v3104_v59  ;;  %v972_v46 = vpack.c.bf16 %v932_v3, %v928_v6  ;;  %v2026_v48 = vadd.f32 -1.0, %v2944_v29  ;;  %v4223_v51 = vld [vmem:[#allocation8_spill] sm:$0xff]  ;;  %1032 = vperm.xlu0 %2139, %v990_v42  }
  0xd9   :  { %v352_v21 = vadd.f32 %v3019_v57, %v2716_v23  ;;  %v4222_v16 = vpack.c.bf16 %v3032_v38, %v3029_v25  ;;  %2214 = vpow2.f32 %v746_v18  ;;  %v930_v29 = vsel %vm674_vm6, %v2880_v49, %v2022_v47  ;;  %v4225_v38 = vld [vmem:[#allocation10_spill] sm:$0xff]  ;;  %1047 = vperm.xlu1 %2138, %v993_v62  }
  0xda   :  { %1131 = vmatpush1.bf16.msra.mxu0 %v4221_v35  ;;  %v353_v23 = vadd.f32 %v3019_v57, %v4223_v51  ;;  %v354_v52 = vadd.f32 %v3019_v57, %v4224_v24  ;;  %v267_v22 = vpop.permute.xlu1 %266  ;;  %2216 = vpow2.f32 %v748_v30  ;;  %v934_v25 = vsel %vm678_vm7, %v2862_v36, %v2026_v48  ;;  %v992_v36 = vld [vmem:[%s4179_s4 + $0x40] sm:$0xff]  ;;  %v406_v48 = vpop.permute.xlu0 %405 }
  0xdb   :  { %1244 = vmatpush1.bf16.msra.mxu1 %v4222_v16  ;;  %1132 = vmatprep.subr.bf16.mxu0 %v973_v15  ;;  %v355_v15 = vadd.f32 %v3019_v57, %v4225_v38  ;;  %v516_v50 = vmul.f32 %v2625_v0, %v3054_v13  ;;  %v974_v49 = vpack.c.bf16 %v934_v25, %v930_v29  ;;  %2218 = vpow2.f32 %v750_v32  ;;  %v1675_v32 = vld [vmem:[%s4180_s5 + $0x8] sm:$0xff] }
  0xdc   :  { %1245 = vmatprep.subr.bf16.mxu1 %v975_v5  ;;  %v517_v31 = vmul.f32 %v2627_v1, %v3054_v13  ;;  %v518_v12 = vmul.f32 %v2629_v2, %v3054_v13  ;;  %v519_v17 = vmul.f32 %v2631_v4, %v3054_v13  ;;  %v196_v7 = vmul.f32 %v2618_v60, %v86_v58  ;;  %v4226_v25 = vld [vmem:[#allocation23_spill] sm:$0xff] }
  0xdd   :  { %v3158_v57 = vadd.f32 %v516_v50, %v352_v21  ;;  %v197_v5 = vmul.f32 %v2609_v55, %v86_v58  ;;  %v198_v63 = vmul.f32 %v2621_v61, %v86_v58  ;;  %vm665_vm8 = vcmp.gt.f32.partialorder %v2898_v40, 0.0  ;;  %1042 = vperm.xlu0 %2139, %v992_v36   ;;  %1057 = vperm.xlu1 %2138, %v995_v9   ;;  %v4227_v50 = vld [vmem:[#allocation27_spill] sm:$0xff] }
  0xde   :  { %1133 = vmatpush1.bf16.msra.mxu0 %v972_v46  ;;  %v3165_v34 = vadd.f32 %v517_v31, %v353_v23  ;;  %v3167_v13 = vadd.f32 %v518_v12, %v354_v52  ;;  %v3169_v39 = vadd.f32 %v519_v17, %v355_v15  ;;  %v3172_v37 = vpop.permute.xlu1 %271  ;;  %vm669_vm9 = vcmp.gt.f32.partialorder %v2935_v41, 0.0 }
  0xdf   :  { %1246 = vmatpush1.bf16.msra.mxu1 %v974_v49  ;;  %v752_v54 = vmul.f32 1.442695, %v3158_v57  ;;  %v2013_v53 = vadd.f32 -1.0, %v3008_v20  ;;  %v199_v6 = vmul.f32 %v2612_v56, %v86_v58  ;;  %v2017_v3 = vadd.f32 -1.0, %v3076_v8  ;;  %v994_v20 = vld [vmem:[%s4179_s4 + $0x50] sm:$0xff] }
  0xe0   :  { %v754_v44 = vmul.f32 1.442695, %v3165_v34  ;;  %v756_v18 = vmul.f32 1.442695, %v3167_v13  ;;  %v758_v30 = vmul.f32 1.442695, %v3169_v39  ;;  %v340_v35 = vadd.f32 %v267_v22, %v196_v7 }
  0xe1   :  { %2220 = vpow2.f32 %v752_v54  ;;  %v921_v47 = vsel %vm665_vm8, %v2898_v40, %v2013_v53  ;;  %vm667_vm10 = vcmp.gt.f32.partialorder %v2904_v19, 0.0  ;;  %v2015_v58 = vadd.f32 -1.0, %v3035_v27  ;;  %1052 = vperm.xlu0 %2139, %v994_v20   ;;  %1697 = vperm.xlu1 %2138, %v1675_v32   ;;  %v4228_v7 = vld [vmem:[#allocation25_spill] sm:$0xff]  ;;  %v398_v20 = vpop.permute.xlu0 %397 }
  0xe2   :  { %2222 = vpow2.f32 %v754_v44  ;;  %v2019_v46 = vadd.f32 -1.0, %v3099_v11  ;;  %v925_v40 = vsel %vm669_vm9, %v2935_v41, %v2017_v3  ;;  %vm671_vm11 = vcmp.gt.f32.partialorder %v2946_v14, 0.0  ;;  %v1674_v11 = vld [vmem:[%s4180_s5] sm:$0xff] }
  0xe3   :  { %2224 = vpow2.f32 %v756_v18  ;;  %v341_v8 = vadd.f32 %v267_v22, %v197_v5  ;;  %v3197_v21 = vpop.permute.xlu1 %409  ;;  %v969_v42 = vpack.c.bf16 %v925_v40, %v921_v47  ;;  %v923_v62 = vsel %vm667_vm10, %v2904_v19, %v2015_v58  ;;  %v1676_v19 = vld [vmem:[%s4180_s5 + $0x10] sm:$0xff]  ;;  %v996_v44 = vld [vmem:[%s4179_s4 + $0x60] sm:$0xff]  ;;  %v1677_v18 = vld [vmem:[%s4180_s5 + $0x18] sm:$0xff] }
  0xe4   :  { %v927_v16 = vsel %vm671_vm11, %v2946_v14, %v2019_v46  ;;  %v342_v27 = vadd.f32 %v267_v22, %v198_v63  ;;  %v3204_v29 = vpop.eup %2212  ;;  %v343_v51 = vadd.f32 %v267_v22, %v199_v6  ;;  %v504_v23 = vmul.f32 %v2625_v0, %v406_v48  ;;  %v4229_v5 = vld [vmem:[#allocation24_spill] sm:$0xff]  ;;  %v4230_v47 = vld [vmem:[#allocation26_spill] sm:$0xff]  ;;  %v4231_v46 = vld [vmem:[#allocation11_spill] sm:$0xff] }
  0xe5   :  { %v971_v41 = vpack.c.bf16 %v927_v16, %v923_v62  ;;  %v505_v24 = vmul.f32 %v2627_v1, %v406_v48  ;;  %2226 = vpow2.f32 %v758_v30  ;;  %1134 = vmatprep.subr.bf16.mxu0 %v969_v42  ;;  %v506_v14 = vmul.f32 %v2629_v2, %v406_v48  ;;  %1692 = vperm.xlu0 %2139, %v1674_v11   ;;  %v4234_v11 = vld [vmem:[#allocation14_spill] sm:$0xff] }
  0xe6   :  { %v507_v52 = vmul.f32 %v2631_v4, %v406_v48  ;;  %vm664_vm12 = vcmp.gt.f32.partialorder %v4226_v25, 0.0  ;;  %v3214_v38 = vpop.eup %2214  ;;  %v3216_v22 = vadd.f32 %v504_v23, %v340_v35  ;;  %v2012_v49 = vadd.f32 -1.0, %v4227_v50  ;;  %1702 = vperm.xlu1 %2138, %v1676_v19  }
  0xe7   :  { %1247 = vmatprep.subr.bf16.mxu1 %v971_v41  ;;  %v3218_v15 = vadd.f32 %v505_v24, %v341_v8  ;;  %v2016_v31 = vadd.f32 -1.0, %v3066_v10  ;;  %v3222_v12 = vpop.eup %2216  ;;  %v3224_v17 = vadd.f32 %v506_v14, %v342_v27  ;;  %vm668_vm13 = vcmp.gt.f32.partialorder %v4228_v7, 0.0  ;;  %v4232_v8 = vld [vmem:[#allocation12_spill] sm:$0xff] }
  0xe8   :  { %v3226_v36 = vadd.f32 %v507_v52, %v343_v51  ;;  %vm666_vm14 = vcmp.gt.f32.partialorder %v4229_v5, 0.0  ;;  %v3230_v9 = vpop.permute.xlu1 %75  ;;  %v728_v63 = vmul.f32 1.442695, %v3216_v22  ;;  %v920_v10 = vsel %vm664_vm12, %v4226_v25, %v2012_v49  ;;  %v3244_v30 = vpop.eup %2218 }
  0xe9   :  { %v730_v54 = vmul.f32 1.442695, %v3218_v15  ;;  %v924_v53 = vsel %vm668_vm13, %v4228_v7, %v2016_v31  ;;  %v732_v6 = vmul.f32 1.442695, %v3224_v17  ;;  %vm670_vm15 = vcmp.gt.f32.partialorder %v4230_v47, 0.0  ;;  %1062 = vperm.xlu0 %2139, %v996_v44   ;;  %v998_v44 = vld [vmem:[%s4179_s4 + $0x70] sm:$0xff] }
  0xea   :  { %v968_v3 = vpack.c.bf16 %v924_v53, %v920_v10  ;;  %v2014_v35 = vadd.f32 -1.0, %v3021_v26  ;;  %2228 = vpow2.f32 %v728_v63  ;;  %v734_v32 = vmul.f32 1.442695, %v3226_v36  ;;  %v4233_v26 = vld [vmem:[#allocation13_spill] sm:$0xff]  ;;  %1707 = vperm.xlu1 %2138, %v1677_v18   ;;  %v390_v10 = vpop.permute.xlu0 %389 }
  0xeb   :  { %v2018_v58 = vadd.f32 -1.0, %v3088_v28  ;;  %v344_v48 = vadd.f32 %v3172_v37, %v4231_v46  ;;  %2230 = vpow2.f32 %v730_v54  ;;  %v345_v42 = vadd.f32 %v3172_v37, %v4232_v8  ;;  %v997_v28 = vld [vmem:[%s4179_s4 + $0x68] sm:$0xff] }
  0xec   :  { %1135 = vmatpush1.bf16.msra.mxu0 %v968_v3  ;;  %v922_v40 = vsel %vm666_vm14, %v4229_v5, %v2014_v35  ;;  %v346_v62 = vadd.f32 %v3172_v37, %v4233_v26  ;;  %v3260_v16 = vpop.permute.xlu1 %256  ;;  %v347_v41 = vadd.f32 %v3172_v37, %v4234_v11  ;;  %v508_v51 = vmul.f32 %v2625_v0, %v3197_v21  ;;  %v1678_v37 = vld [vmem:[%s4180_s5 + $0x20] sm:$0xff] }
  0xed   :  { %v926_v27 = vsel %vm670_vm15, %v4230_v47, %v2018_v58  ;;  %v509_v23 = vmul.f32 %v2627_v1, %v3197_v21  ;;  %2232 = vpow2.f32 %v732_v6  ;;  %v510_v14 = vmul.f32 %v2629_v2, %v3197_v21  ;;  %1067 = vperm.xlu0 %2139, %v997_v28  }
  0xee   :  { %v3274_v24 = vpop.eup %2220  ;;  %v970_v19 = vpack.c.bf16 %v926_v27, %v922_v40  ;;  %v511_v52 = vmul.f32 %v2631_v4, %v3197_v21  ;;  %2234 = vpow2.f32 %v734_v32  ;;  %v3283_v50 = vadd.f32 %v508_v51, %v344_v48  ;;  %1712 = vperm.xlu1 %2138, %v1678_v37   ;;  %v1679_v48 = vld [vmem:[%s4180_s5 + $0x28] sm:$0xff] }
  0xef   :  { %v2223_v25 = vpop.eup %2222  ;;  %v3285_v49 = vadd.f32 %v509_v23, %v345_v42  ;;  %v496_v31 = vmul.f32 %v2625_v0, %v398_v20  ;;  %v3290_v5 = vadd.f32 %v510_v14, %v346_v62  ;;  %v497_v21 = vmul.f32 %v2627_v1, %v398_v20  ;;  %v1681_v23 = vld [vmem:[%s4180_s5 + $0x38] sm:$0xff] }
  0xf0   :  { %v3288_v7 = vpop.eup %2224  ;;  %1248 = vmatpush1.bf16.msra.mxu1 %v970_v19  ;;  %v3292_v63 = vadd.f32 %v511_v52, %v347_v41  ;;  %v498_v54 = vmul.f32 %v2629_v2, %v398_v20  ;;  %v3296_v53 = vpop.permute.xlu1 %261  ;;  %v736_v18 = vmul.f32 1.442695, %v3283_v50  ;;  %v499_v3 = vmul.f32 %v2631_v4, %v398_v20 }
  0xf1   :  { %v738_v6 = vmul.f32 1.442695, %v3285_v49  ;;  %v188_v47 = vmul.f32 %v2618_v60, %v3230_v9  ;;  %v740_v35 = vmul.f32 1.442695, %v3290_v5  ;;  %v189_v58 = vmul.f32 %v2609_v55, %v3230_v9  ;;  %1072 = vperm.xlu0 %2139, %v998_v44  }
  0xf2   :  { %v742_v32 = vmul.f32 1.442695, %v3292_v63  ;;  %v190_v46 = vmul.f32 %v2621_v61, %v3230_v9  ;;  %v2227_v40 = vpop.eup %2226  ;;  %2236 = vpow2.f32 %v736_v18  ;;  %v191_v20 = vmul.f32 %v2612_v56, %v3230_v9  ;;  %v999_v9 = vld [vmem:[%s4179_s4 + $0x78] sm:$0xff]  ;;  %1717 = vperm.xlu1 %2138, %v1679_v48  }
  0xf3   :  { %v3318_v8 = vmul.f32 %v2625_v0, %v390_v10  ;;  %v3321_v42 = vmul.f32 %v2627_v1, %v390_v10  ;;  %2238 = vpow2.f32 %v738_v6  ;;  %v3324_v26 = vmul.f32 %v2629_v2, %v390_v10 }
  0xf4   :  { %v3327_v62 = vmul.f32 %v2631_v4, %v390_v10  ;;  %vm657_vm0 = vcmp.gt.f32.partialorder %v3090_v33, 0.0  ;;  %vm661_vm1 = vcmp.gt.f32.partialorder %v3165_v34, 0.0  ;;  %v2005_v28 = vadd.f32 -1.0, %v3214_v38 }
  0xf5   :  { %v2009_v27 = vadd.f32 -1.0, %v2223_v25  ;;  %vm659_vm2 = vcmp.gt.f32.partialorder %v3104_v59, 0.0  ;;  %2240 = vpow2.f32 %v742_v32  ;;  %vm663_vm3 = vcmp.gt.f32.partialorder %v3169_v39, 0.0  ;;  %v3338_v51 = vpop.permute.xlu1 %401  ;;  %1077 = vperm.xlu0 %2139, %v999_v9  }
  0xf6   :  { %v2007_v11 = vadd.f32 -1.0, %v3244_v30  ;;  %v2011_v41 = vadd.f32 -1.0, %v2227_v40  ;;  %v913_v19 = vsel %vm657_vm0, %v3090_v33, %v2005_v28  ;;  %v332_v14 = vadd.f32 %v3260_v16, %v188_v47  ;;  %v1680_v33 = vld [vmem:[%s4180_s5 + $0x30] sm:$0xff]  ;;  %1727 = vperm.xlu1 %2138, %v1681_v23   ;;  %v4236_v23 = vld [vmem:[#allocation17_spill] sm:$0xff] }
  0xf7   :  { %v917_v38 = vsel %vm661_vm1, %v3165_v34, %v2009_v27  ;;  %v333_v52 = vadd.f32 %v3260_v16, %v189_v58  ;;  %v3347_v37 = vpop.eup %2228  ;;  %v334_v44 = vadd.f32 %v3260_v16, %v190_v46  ;;  %v335_v6 = vadd.f32 %v3260_v16, %v191_v20  ;;  %v1683_v58 = vld [vmem:[%s4180_s5 + $0x48] sm:$0xff]  ;;  %v1685_v27 = vld [vmem:[%s4180_s5 + $0x58] sm:$0xff] }
  0xf8   :  { %v965_v25 = vpack.c.bf16 %v917_v38, %v913_v19  ;;  %v915_v30 = vsel %vm659_vm2, %v3104_v59, %v2007_v11  ;;  %v919_v10 = vsel %vm663_vm3, %v3169_v39, %v2011_v41  ;;  %v3355_v18 = vpop.eup %2230  ;;  %v3358_v47 = vadd.f32 %v496_v31, %v332_v14  ;;  %v4235_v41 = vld [vmem:[#allocation16_spill] sm:$0xff] }
  0xf9   :  { %v967_v34 = vpack.c.bf16 %v919_v10, %v915_v30  ;;  %v3360_v32 = vadd.f32 %v497_v21, %v333_v52  ;;  %2242 = vpow2.f32 %v740_v35  ;;  %v3362_v59 = vadd.f32 %v498_v54, %v334_v44  ;;  %1722 = vperm.xlu0 %2139, %v1680_v33   ;;  %v4238_v52 = vld [vmem:[#allocation19_spill] sm:$0xff] }
  0xfa   :  { %1136 = vmatprep.subr.bf16.mxu0 %v965_v25  ;;  %vm656_vm4 = vcmp.gt.f32.partialorder %v3083_v43, 0.0  ;;  %v2004_v39 = vadd.f32 -1.0, %v3204_v29  ;;  %v3369_v46 = vpop.eup %2232  ;;  %v3371_v16 = vadd.f32 %v499_v3, %v335_v6  ;;  %v712_v31 = vmul.f32 1.442695, %v3358_v47  ;;  %v66_v40 = vpop.permute.xlu1 %65  ;;  %v1682_v3 = vld [vmem:[%s4180_s5 + $0x40] sm:$0xff]  ;;  %1737 = vperm.xlu1 %2138, %v1683_v58  }
  0xfb   :  { %1249 = vmatprep.subr.bf16.mxu1 %v967_v34  ;;  %v714_v21 = vmul.f32 1.442695, %v3360_v32  ;;  %v2008_v54 = vadd.f32 -1.0, %v3274_v24  ;;  %v3376_v35 = vpop.eup %2234  ;;  %v716_v29 = vmul.f32 1.442695, %v3362_v59  ;;  %vm660_vm5 = vcmp.gt.f32.partialorder %v3158_v57, 0.0 }
  0xfc   :  { %v912_v48 = vsel %vm656_vm4, %v3083_v43, %v2004_v39  ;;  %vm658_vm6 = vcmp.gt.f32.partialorder %v3092_v45, 0.0  ;;  %2244 = vpow2.f32 %v712_v31  ;;  %vm662_vm7 = vcmp.gt.f32.partialorder %v3167_v13, 0.0  ;;  %v1684_v34 = vld [vmem:[%s4180_s5 + $0x50] sm:$0xff]  ;;  %v1687_v31 = vld [vmem:[%s4180_s5 + $0x68] sm:$0xff] }
  0xfd   :  { %v916_v20 = vsel %vm660_vm5, %v3158_v57, %v2008_v54  ;;  %v2006_v24 = vadd.f32 -1.0, %v3222_v12  ;;  %2246 = vpow2.f32 %v714_v21  ;;  %v718_v9 = vmul.f32 1.442695, %v3371_v16  ;;  %1732 = vperm.xlu0 %2139, %v1682_v3  }
  0xfe   :  { %v964_v28 = vpack.c.bf16 %v916_v20, %v912_v48  ;;  %v2010_v43 = vadd.f32 -1.0, %v3288_v7  ;;  %2248 = vpow2.f32 %v716_v29  ;;  %v336_v57 = vadd.f32 %v3296_v53, %v4235_v41  ;;  %v4237_v7 = vld [vmem:[#allocation18_spill] sm:$0xff]  ;;  %1747 = vperm.xlu1 %2138, %v1685_v27   ;;  %v247_v58 = vpop.permute.xlu1 %246 }
  0xff   :  { %v914_v11 = vsel %vm658_vm6, %v3092_v45, %v2006_v24  ;;  %v337_v12 = vadd.f32 %v3296_v53, %v4236_v23  ;;  %v3398_v19 = vpop.eup %2236  ;;  %v338_v14 = vadd.f32 %v3296_v53, %v4237_v7  ;;  %v339_v25 = vadd.f32 %v3296_v53, %v4238_v52 }
 0x100   :  { %1137 = vmatpush1.bf16.msra.mxu0 %v964_v28  ;;  %v918_v38 = vsel %vm662_vm7, %v3167_v13, %v2010_v43  ;;  %v500_v45 = vmul.f32 %v2625_v0, %v3338_v51  ;;  %v2239_v30 = vpop.eup %2238  ;;  %v501_v44 = vmul.f32 %v2627_v1, %v3338_v51  ;;  %v502_v33 = vmul.f32 %v2629_v2, %v3338_v51 }
 0x101   :  { %v966_v10 = vpack.c.bf16 %v918_v38, %v914_v11  ;;  %v503_v13 = vmul.f32 %v2631_v4, %v3338_v51  ;;  %2250 = vpow2.f32 %v718_v9  ;;  %v180_v6 = vmul.f32 %v2618_v60, %v66_v40  ;;  %1742 = vperm.xlu0 %2139, %v1684_v34   ;;  %v1686_v60 = vld [vmem:[%s4180_s5 + $0x60] sm:$0xff]  ;;  %v4239_v34 = vld [vmem:[#allocation15_spill] sm:$0xff] }
 0x102   :  { %v3416_v53 = vadd.f32 %v500_v45, %v336_v57  ;;  %v181_v39 = vmul.f32 %v2609_v55, %v66_v40  ;;  %v2241_v21 = vpop.eup %2240  ;;  %v3423_v51 = vadd.f32 %v501_v44, %v337_v12  ;;  %v3425_v54 = vadd.f32 %v502_v33, %v338_v14  ;;  %1757 = vperm.xlu1 %2138, %v1687_v31   ;;  %v252_v12 = vpop.permute.xlu1 %251 }
 0x103   :  { %1250 = vmatpush1.bf16.msra.mxu1 %v966_v10  ;;  %v3427_v29 = vadd.f32 %v503_v13, %v339_v25  ;;  %v182_v48 = vmul.f32 %v2621_v61, %v66_v40  ;;  %vm649_vm8 = vcmp.gt.f32.partialorder %v3218_v15, 0.0  ;;  %vm653_vm9 = vcmp.gt.f32.partialorder %v3285_v49, 0.0 }
 0x104   :  { %v720_v3 = vmul.f32 1.442695, %v3416_v53  ;;  %v1997_v55 = vadd.f32 -1.0, %v3355_v18  ;;  %v722_v20 = vmul.f32 1.442695, %v3423_v51  ;;  %v183_v61 = vmul.f32 %v2612_v56, %v66_v40  ;;  %v1689_v18 = vld [vmem:[%s4180_s5 + $0x78] sm:$0xff] }
 0x105   :  { %v724_v24 = vmul.f32 1.442695, %v3425_v54  ;;  %v726_v9 = vmul.f32 1.442695, %v3427_v29  ;;  %v2001_v28 = vadd.f32 -1.0, %v2239_v30  ;;  %v324_v27 = vadd.f32 %v247_v58, %v180_v6  ;;  %1752 = vperm.xlu0 %2139, %v1686_v60   ;;  %v4241_v60 = vld [vmem:[#allocation21_spill] sm:$0xff] }
 0x106   :  { %2252 = vpow2.f32 %v720_v3  ;;  %v905_v43 = vsel %vm649_vm8, %v3218_v15, %v1997_v55  ;;  %v2243_v11 = vpop.eup %2242  ;;  %vm651_vm10 = vcmp.gt.f32.partialorder %v3226_v36, 0.0  ;;  %v1999_v41 = vadd.f32 -1.0, %v3376_v35  ;;  %1767 = vperm.xlu1 %2138, %v1689_v18   ;;  %v1688_v35 = vld [vmem:[%s4180_s5 + $0x70] sm:$0xff] }
 0x107   :  { %2254 = vpow2.f32 %v722_v20  ;;  %v2003_v57 = vadd.f32 -1.0, %v2241_v21  ;;  %v909_v40 = vsel %vm653_vm9, %v3285_v49, %v2001_v28  ;;  %vm655_vm11 = vcmp.gt.f32.partialorder %v3292_v63, 0.0 }
 0x108   :  { %v325_v23 = vadd.f32 %v247_v58, %v181_v39  ;;  %v326_v15 = vadd.f32 %v247_v58, %v182_v48  ;;  %2256 = vpow2.f32 %v726_v9  ;;  %v961_v38 = vpack.c.bf16 %v909_v40, %v905_v43  ;;  %v1918_v39 = vld [vmem:[#allocation2] sm:$0x1] }
 0x109   :  { %v907_v7 = vsel %vm651_vm10, %v3226_v36, %v1999_v41  ;;  %v911_v14 = vsel %vm655_vm11, %v3292_v63, %v2003_v57  ;;  %v3456_v52 = vpop.eup %2244  ;;  %v327_v25 = vadd.f32 %v247_v58, %v183_v61  ;;  %v3459_v45 = vadd.f32 %v3318_v8, %v324_v27  ;;  %1762 = vperm.xlu0 %2139, %v1688_v35  }
 0x10a   :  { %v963_v49 = vpack.c.bf16 %v911_v14, %v907_v7  ;;  %v3462_v30 = vadd.f32 %v3321_v42, %v325_v23  ;;  %v2247_v10 = vpop.eup %2246  ;;  %2258 = vpow2.f32 %v724_v24  ;;  %1138 = vmatprep.subr.bf16.mxu0 %v961_v38  ;;  %v3465_v36 = vadd.f32 %v3324_v26, %v326_v15  ;;  %v4242_v24 = vld [vmem:[#allocation22_spill] sm:$0xff] }
 0x10b   :  { %vm648_vm12 = vcmp.gt.f32.partialorder %v3216_v22, 0.0  ;;  %v1996_v63 = vadd.f32 -1.0, %v3347_v37  ;;  %v3469_v44 = vpop.eup %2248  ;;  %v3472_v33 = vadd.f32 %v3327_v62, %v327_v25  ;;  %v696_v8 = vmul.f32 1.442695, %v3459_v45 }
 0x10c   :  { %1251 = vmatprep.subr.bf16.mxu1 %v963_v49  ;;  %v698_v42 = vmul.f32 1.442695, %v3462_v30  ;;  %v2000_v13 = vadd.f32 -1.0, %v3398_v19  ;;  %v187_v26 = vmul.f32 %v2612_v56, %v4239_v34  ;;  %v700_v6 = vmul.f32 1.442695, %v3465_v36  ;;  %v394_v19 = vpop.permute.xlu1 %393 }
 0x10d   :  { %vm652_vm13 = vcmp.gt.f32.partialorder %v3283_v50, 0.0  ;;  %v904_v37 = vsel %vm648_vm12, %v3216_v22, %v1996_v63  ;;  %vm650_vm14 = vcmp.gt.f32.partialorder %v3224_v17, 0.0  ;;  %vm654_vm15 = vcmp.gt.f32.partialorder %v3290_v5, 0.0  ;;  %v4240_v22 = vld [vmem:[#allocation20_spill] sm:$0xff]  ;;  %1921 = vperm.xlu0 %2139, %v1918_v39  }
 0x10e   :  { %v908_v62 = vsel %vm652_vm13, %v3283_v50, %v2000_v13  ;;  %v1998_v58 = vadd.f32 -1.0, %v3369_v46  ;;  %v2251_v31 = vpop.eup %2250  ;;  %2260 = vpow2.f32 %v696_v8  ;;  %v702_v56 = vmul.f32 1.442695, %v3472_v33 }
 0x10f   :  { %v960_v21 = vpack.c.bf16 %v908_v62, %v904_v37  ;;  %v2002_v48 = vadd.f32 -1.0, %v2243_v11  ;;  %2262 = vpow2.f32 %v698_v42  ;;  %v328_v55 = vadd.f32 %v252_v12, %v4240_v22 }
 0x110   :  { %v906_v3 = vsel %vm650_vm14, %v3224_v17, %v1998_v58  ;;  %v329_v50 = vadd.f32 %v252_v12, %v4241_v60  ;;  %v330_v46 = vadd.f32 %v252_v12, %v4242_v24  ;;  %v331_v9 = vadd.f32 %v252_v12, %v187_v26 }
 0x111   :  { %1139 = vmatpush1.bf16.msra.mxu0 %v960_v21  ;;  %v910_v20 = vsel %vm654_vm15, %v3290_v5, %v2002_v48  ;;  %v492_v61 = vmul.f32 %v2625_v0, %v394_v19  ;;  %v493_v43 = vmul.f32 %v2627_v1, %v394_v19  ;;  %v494_v27 = vmul.f32 %v2629_v2, %v394_v19 }
 0x112   :  { %v962_v28 = vpack.c.bf16 %v910_v20, %v906_v3  ;;  %v495_v17 = vmul.f32 %v2631_v4, %v394_v19  ;;  %2264 = vpow2.f32 %v700_v6  ;;  %v1989_v41 = vadd.f32 -1.0, %v2247_v10 }
 0x113   :  { %v2253_v18 = vpop.eup %2252  ;;  %v3496_v11 = vadd.f32 %v492_v61, %v328_v55  ;;  %2266 = vpow2.f32 %v702_v56  ;;  %v3498_v5 = vadd.f32 %v493_v43, %v329_v50  ;;  %v3500_v40 = vadd.f32 %v494_v27, %v330_v46  ;;  %v2140_v27 = vld [vmem:[%s4178_s3] sm:$0xff]  }
 0x114   :  { %v2255_v57 = vpop.eup %2254  ;;  %1252 = vmatpush1.bf16.msra.mxu1 %v962_v28  ;;  %v3502_v0 = vadd.f32 %v495_v17, %v331_v9  ;;  %vm641_vm0 = vcmp.gt.f32.partialorder %v3360_v32, 0.0  ;;  %vm645_vm1 = vcmp.gt.f32.partialorder %v3423_v51, 0.0  ;;  %v1991_v14 = vadd.f32 -1.0, %v2251_v31  ;;  %v2142_v17 = vld [vmem:[%s4178_s3 + $0x10] sm:$0xff]  }
 0x115   :  { %v704_v1 = vmul.f32 1.442695, %v3496_v11  ;;  %v1993_v2 = vadd.f32 -1.0, %v2255_v57  ;;  %v2257_v4 = vpop.eup %2256  ;;  %v706_v23 = vmul.f32 1.442695, %v3498_v5  ;;  %v897_v38 = vsel %vm641_vm0, %v3360_v32, %v1989_v41  ;;  %v2145_v41 = vld [vmem:[%s4178_s3 + $0x28] sm:$0xff]  }
 0x116   :  { %v708_v15 = vmul.f32 1.442695, %v3500_v40  ;;  %v710_v12 = vmul.f32 1.442695, %v3502_v0  ;;  %v1995_v35 = vadd.f32 -1.0, %v2257_v4  ;;  %vm643_vm2 = vcmp.gt.f32.partialorder %v3371_v16, 0.0 }
 0x117   :  { %2268 = vpow2.f32 %v704_v1  ;;  %v901_v7 = vsel %vm645_vm1, %v3423_v51, %v1993_v2  ;;  %v2259_v49 = vpop.eup %2258  ;;  %vm647_vm3 = vcmp.gt.f32.partialorder %v3427_v29, 0.0  ;;  %v899_v10 = vsel %vm643_vm2, %v3371_v16, %v1991_v14  ;;  %v2146_v57 = vld [vmem:[%s4178_s3 + $0x30] sm:$0xff]  }
 0x118   :  { %2270 = vpow2.f32 %v706_v23  ;;  %v957_v25 = vpack.c.bf16 %v901_v7, %v897_v38  ;;  %v903_v63 = vsel %vm647_vm3, %v3427_v29, %v1995_v35  ;;  %v1988_v8 = vadd.f32 -1.0, %v3456_v52 }
 0x119   :  { %2272 = vpow2.f32 %v708_v15  ;;  %v959_v32 = vpack.c.bf16 %v903_v63, %v899_v10  ;;  %v1992_v51 = vadd.f32 -1.0, %v2253_v18  ;;  %vm640_vm4 = vcmp.gt.f32.partialorder %v3358_v47, 0.0  ;;  %v2143_v18 = vld [vmem:[%s4178_s3 + $0x18] sm:$0xff]  }
 0x11a   :  { %2274 = vpow2.f32 %v710_v12  ;;  %1140 = vmatprep.subr.bf16.mxu0 %v957_v25  ;;  %vm644_vm5 = vcmp.gt.f32.partialorder %v3416_v53, 0.0  ;;  %v1990_v42 = vadd.f32 -1.0, %v3469_v44  ;;  %v1994_v13 = vadd.f32 -1.0, %v2259_v49 }
 0x11b   :  { %v2261_v34 = vpop.eup %2260  ;;  %1253 = vmatprep.subr.bf16.mxu1 %v959_v32  ;;  %v896_v26 = vsel %vm640_vm4, %v3358_v47, %v1988_v8  ;;  %v900_v16 = vsel %vm644_vm5, %v3416_v53, %v1992_v51  ;;  %vm642_vm6 = vcmp.gt.f32.partialorder %v3362_v59, 0.0  ;;  %vm646_vm7 = vcmp.gt.f32.partialorder %v3425_v54, 0.0 }
 0x11c   :  { %v2263_v29 = vpop.eup %2262  ;;  %v956_v52 = vpack.c.bf16 %v900_v16, %v896_v26  ;;  %v898_v6 = vsel %vm642_vm6, %v3362_v59, %v1990_v42  ;;  %v902_v37 = vsel %vm646_vm7, %v3425_v54, %v1994_v13  ;;  %v1980_v19 = vadd.f32 -1.0, %v2261_v34 }
 0x11d   :  { %v958_v39 = vpack.c.bf16 %v902_v37, %v898_v6  ;;  %v1981_v58 = vadd.f32 -1.0, %v2263_v29  ;;  %vm633_vm8 = vcmp.gt.f32.partialorder %v3462_v30, 0.0  ;;  %vm637_vm9 = vcmp.gt.f32.partialorder %v3498_v5, 0.0 }
 0x11e   :  { %1141 = vmatpush1.bf16.msra.mxu0 %v956_v52  ;;  %vm635_vm10 = vcmp.gt.f32.partialorder %v3472_v33, 0.0  ;;  %vm632_vm11 = vcmp.gt.f32.partialorder %v3459_v45, 0.0  ;;  %vm636_vm12 = vcmp.gt.f32.partialorder %v3496_v11, 0.0  ;;  %vm634_vm13 = vcmp.gt.f32.partialorder %v3465_v36, 0.0 }
 0x11f   :  { %v2265_v44 = vpop.eup %2264  ;;  %1254 = vmatpush1.bf16.msra.mxu1 %v958_v39  ;;  %v889_v21 = vsel %vm633_vm8, %v3462_v30, %v1981_v58  ;;  %v888_v22 = vsel %vm632_vm11, %v3459_v45, %v1980_v19  ;;  %vm638_vm14 = vcmp.gt.f32.partialorder %v3500_v40, 0.0  ;;  %vm639_vm15 = vcmp.gt.f32.partialorder %v3502_v0, 0.0 }
 0x120   :  { %v2267_v62 = vpop.eup %2266  ;;  %v1982_v31 = vadd.f32 -1.0, %v2265_v44 }
 0x121   :  { %v1983_v48 = vadd.f32 -1.0, %v2267_v62 }
 0x122   :  { %v890_v46 = vsel %vm634_vm13, %v3465_v36, %v1982_v31  ;;  %v4243_v36 = vmov 0  }
 0x123   :  { %v891_v9 = vsel %vm635_vm10, %v3472_v33, %v1983_v48  ;;  %v2141_v33 = vld [vmem:[%s4178_s3 + $0x8] sm:$0xff]  }
 0x124   :  { %v2269_v47 = vpop.eup %2268 }
 0x125   :  { %v2271_v53 = vpop.eup %2270  ;;  %v1984_v59 = vadd.f32 -1.0, %v2269_v47 }
 0x126   :  { %v2273_v54 = vpop.eup %2272  ;;  %v1985_v56 = vadd.f32 -1.0, %v2271_v53 }
 0x127   :  { %v2275_v3 = vpop.eup %2274  ;;  %v892_v55 = vsel %vm636_vm12, %v3496_v11, %v1984_v59  ;;  %v1986_v60 = vadd.f32 -1.0, %v2273_v54  ;;  %v2144_v11 = vld [vmem:[%s4178_s3 + $0x20] sm:$0xff]  }
 0x128   :  { %v893_v50 = vsel %vm637_vm9, %v3498_v5, %v1985_v56  ;;  %v1987_v20 = vadd.f32 -1.0, %v2275_v3  ;;  %v952_v24 = vpack.c.bf16 %v892_v55, %v888_v22  ;;  %v2147_v5 = vld [vmem:[%s4178_s3 + $0x38] sm:$0xff]   ;;  %s2429_s3 = smov [#allocation3]  }
 0x129   :  { %v953_v30 = vpack.c.bf16 %v893_v50, %v889_v21  ;;  %v894_v45 = vsel %vm638_vm14, %v3500_v40, %v1986_v60  ;;  %s1972_s0 = sshll.u32 %s2429_s3, 4  ;;  %s1973_s0 = int_to_ptr.vmem [resolvable:$true] %s1972_s0 }
 0x12a   :  { %v895_v61 = vsel %vm639_vm15, %v3502_v0, %v1987_v20  ;;  %v954_v28 = vpack.c.bf16 %v894_v45, %v890_v46  ;;  %s2404_s15 = scalar_lea.vmem %s1973_s0, 64  ;;  %p2409_p1 = scmp.lt.s32.totalorder %s1973_s0, %s1973_s0 }
 0x12b   :  { %1142 = vmatprep.subr.bf16.mxu0 %v953_v30  ;;  %v955_v43 = vpack.c.bf16 %v895_v61, %v891_v9  ;;  %p2405_p0 = scmp.ne.s32.totalorder %s1973_s0, %s2404_s15  ;;  %p2410_p2 = scmp.lt.s32.totalorder %s2404_s15, %s2404_s15 }
 0x12c   :  { %1143 = vmatpush1.bf16.msra.mxu0 %v952_v24 }
 0x12d   :  { %1255 = vmatprep.subr.bf16.mxu1 %v955_v43  ;;  %p2411_p3 = por %p2410_p2, %p2409_p1 }
 0x12e   :  { %1256 = vmatpush1.bf16.msra.mxu1 %v954_v28 }
 0x12f   :  { %1161 = vmatmul.mubr.bf16.vlgmr.msra.gmra.mxu0 %v2140_v27  ;;  %p2412_p4 = pnand %p2411_p3, %p2405_p0 }
 0x130   :  { %1170 = vmatprep.mubr.bf16.mxu0 %v4243_v36 }
 0x131   :  { %1274 = vmatmul.mubr.bf16.vlgmr.msra.gmra.mxu1 %v2140_v27 }
 0x132   :  { %1283 = vmatprep.mubr.bf16.mxu1 %v4243_v36 }
 0x137   :  { %1171 = vmatmul.mubr.bf16.gmra.mxu0 %v2141_v33 }
 0x138   :  { %1180 = vmatprep.mubr.bf16.mxu0 %v4243_v36 }
 0x139   :  { %1284 = vmatmul.mubr.bf16.gmra.mxu1 %v2141_v33 }
 0x13a   :  { %1293 = vmatprep.mubr.bf16.mxu1 %v4243_v36 }
 0x13d   :  { %v1003_v0 = vpop.permute.xlu1 %1002 }
 0x13f   :  { %1181 = vmatmul.mubr.bf16.gmra.mxu0 %v2142_v17 }
 0x140   :  { %1190 = vmatprep.mubr.bf16.mxu0 %v4243_v36 }
 0x141   :  { %1294 = vmatmul.mubr.bf16.gmra.mxu1 %v2142_v17 }
 0x142   :  { %1303 = vmatprep.mubr.bf16.mxu1 %v4243_v36 }
 0x144   :  { %v1013_v38 = vpop.permute.xlu1 %1012 }
 0x147   :  { %1191 = vmatmul.mubr.bf16.gmra.mxu0 %v2143_v18 }
 0x148   :  { %1200 = vmatprep.mubr.bf16.mxu0 %v4243_v36  ;;  %v1018_v13 = vpop.permute.xlu1 %1017 }
 0x149   :  { %1304 = vmatmul.mubr.bf16.gmra.mxu1 %v2143_v18 }
 0x14a   :  { %1313 = vmatprep.mubr.bf16.mxu1 %v4243_v36  ;;  %v1008_v63 = vpop.permute.xlu0 %1007 }
 0x14c   :  { %v3608_v53 = vpop.permute.xlu1 %1027 }
 0x14f   :  { %1201 = vmatmul.mubr.bf16.gmra.mxu0 %v2144_v11  ;;  %v3603_v58 = vpop.permute.xlu0 %1022 }
 0x150   :  { %1210 = vmatprep.mubr.bf16.mxu0 %v4243_v36  ;;  %v3623_v24 = vpop.permute.xlu1 %1037 }
 0x151   :  { %1314 = vmatmul.mubr.bf16.gmra.mxu1 %v2144_v11 }
 0x152   :  { %1323 = vmatprep.mubr.bf16.mxu1 %v4243_v36 }
 0x153   :  { %v3621_v50 = vpop.permute.xlu0 %1032 }
 0x154   :  { %v3638_v17 = vpop.permute.xlu1 %1047 }
 0x157   :  { %1211 = vmatmul.mubr.bf16.gmra.mxu0 %v2145_v41 }
 0x158   :  { %1220 = vmatprep.mubr.bf16.mxu0 %v4243_v36 }
 0x159   :  { %1324 = vmatmul.mubr.bf16.gmra.mxu1 %v2145_v41 }
 0x15a   :  { %1333 = vmatprep.mubr.bf16.mxu1 %v4243_v36 }
 0x15f   :  { %1221 = vmatmul.mubr.bf16.gmra.mxu0 %v2146_v57 }
 0x160   :  { %1230 = vmatprep.mubr.bf16.mxu0 %v4243_v36 }
 0x161   :  { %1334 = vmatmul.mubr.bf16.gmra.mxu1 %v2146_v57 }
 0x162   :  { %1343 = vmatprep.mubr.bf16.mxu1 %v4243_v36  ;;  %v3636_v36 = vpop.permute.xlu0 %1042 }
 0x167   :  { %1231 = vmatmul.mubr.bf16.gmra.mxu0 %v2147_v5 }
 0x169   :  { %1344 = vmatmul.mubr.bf16.gmra.mxu1 %v2147_v5 }
 0x1ef   :  { %v1162_v40 = vpop.f32.mrf.mxu0 }
 0x1f0   :  { %v3584_v35 = vadd.f32 %v1162_v40, %v1003_v0 }
 0x1f1   :  { %v1275_v1 = vpop.f32.mrf.mxu1  ;;  %v1164_v2 = vpop.f32.mrf.mxu0 }
 0x1f2   :  { %v3586_v49 = vadd.f32 %v1275_v1, %v1003_v0  ;;  %v3588_v8 = vadd.f32 %v1164_v2, %v1003_v0  ;;  %v1418_v34 = vmul.f32 1.442695, %v3584_v35  ;;  %vm1354_vm0 = vcmp.gt.f32.partialorder %v3584_v35, 0.0 }
 0x1f3   :  { %v1277_v4 = vpop.f32.mrf.mxu1  ;;  %v1166_v23 = vpop.f32.mrf.mxu0 }
 0x1f4   :  { %v3590_v32 = vadd.f32 %v1166_v23, %v1008_v63  ;;  %v1422_v16 = vmul.f32 1.442695, %v3586_v49  ;;  %v1420_v52 = vmul.f32 1.442695, %v3588_v8  ;;  %2276 = vpow2.f32 %v1418_v34 }
 0x1f5   :  { %v1279_v15 = vpop.f32.mrf.mxu1  ;;  %v1168_v12 = vpop.f32.mrf.mxu0  ;;  %v3600_v44 = vadd.f32 %v1277_v4, %v1003_v0  ;;  %vm1356_vm1 = vcmp.gt.f32.partialorder %v3586_v49, 0.0  ;;  %vm1355_vm2 = vcmp.gt.f32.partialorder %v3588_v8, 0.0 }
 0x1f6   :  { %v3593_v26 = vadd.f32 %v1279_v15, %v1008_v63  ;;  %v3596_v29 = vadd.f32 %v1168_v12, %v1008_v63  ;;  %v1426_v37 = vmul.f32 1.442695, %v3590_v32  ;;  %2278 = vpow2.f32 %v1422_v16 }
 0x1f7   :  { %v1281_v7 = vpop.f32.mrf.mxu1  ;;  %v1172_v14 = vpop.f32.mrf.mxu0  ;;  %2280 = vpow2.f32 %v1420_v52  ;;  %v1424_v56 = vmul.f32 1.442695, %v3600_v44  ;;  %vm1357_vm3 = vcmp.gt.f32.partialorder %v3600_v44, 0.0  ;;  %vm1358_vm4 = vcmp.gt.f32.partialorder %v3590_v32, 0.0 }
 0x1f8   :  { %v1430_v62 = vmul.f32 1.442695, %v3593_v26  ;;  %v1428_v19 = vmul.f32 1.442695, %v3596_v29  ;;  %v3606_v47 = vadd.f32 %v1281_v7, %v1008_v63  ;;  %v3610_v59 = vadd.f32 %v1172_v14, %v1013_v38  ;;  %v3662_v14 = vpop.permute.xlu0 %1052 }
 0x1f9   :  { %v1285_v25 = vpop.f32.mrf.mxu1  ;;  %v1174_v10 = vpop.f32.mrf.mxu0  ;;  %2282 = vpow2.f32 %v1426_v37  ;;  %vm1360_vm5 = vcmp.gt.f32.partialorder %v3593_v26, 0.0  ;;  %vm1359_vm6 = vcmp.gt.f32.partialorder %v3596_v29, 0.0 }
 0x1fa   :  { %2284 = vpow2.f32 %v1430_v62  ;;  %v3613_v21 = vadd.f32 %v1285_v25, %v1013_v38  ;;  %v1432_v48 = vmul.f32 1.442695, %v3606_v47  ;;  %v3616_v3 = vadd.f32 %v1174_v10, %v1013_v38 }
 0x1fb   :  { %v1287_v51 = vpop.f32.mrf.mxu1  ;;  %v1176_v42 = vpop.f32.mrf.mxu0  ;;  %2286 = vpow2.f32 %v1428_v19  ;;  %v1434_v22 = vmul.f32 1.442695, %v3610_v59  ;;  %vm1361_vm7 = vcmp.gt.f32.partialorder %v3606_v47, 0.0  ;;  %vm1362_vm8 = vcmp.gt.f32.partialorder %v3610_v59, 0.0 }
 0x1fc   :  { %v3619_v55 = vadd.f32 %v1287_v51, %v1013_v38  ;;  %2288 = vpow2.f32 %v1424_v56  ;;  %v1438_v30 = vmul.f32 1.442695, %v3613_v21  ;;  %v1436_v46 = vmul.f32 1.442695, %v3616_v3 }
 0x1fd   :  { %v1289_v6 = vpop.f32.mrf.mxu1  ;;  %v1178_v39 = vpop.f32.mrf.mxu0  ;;  %2290 = vpow2.f32 %v1432_v48  ;;  %v3628_v9 = vadd.f32 %v1176_v42, %v1018_v13  ;;  %vm1364_vm9 = vcmp.gt.f32.partialorder %v3613_v21, 0.0  ;;  %vm1363_vm10 = vcmp.gt.f32.partialorder %v3616_v3, 0.0 }
 0x1fe   :  { %2292 = vpow2.f32 %v1434_v22  ;;  %v1440_v45 = vmul.f32 1.442695, %v3619_v55  ;;  %v3632_v28 = vadd.f32 %v1289_v6, %v1018_v13  ;;  %v3641_v11 = vadd.f32 %v1178_v39, %v1018_v13  ;;  %v3668_v42 = vpop.permute.xlu1 %1057 }
 0x1ff   :  { %v1291_v31 = vpop.f32.mrf.mxu1  ;;  %v1182_v54 = vpop.f32.mrf.mxu0  ;;  %2294 = vpow2.f32 %v1438_v30  ;;  %v1442_v18 = vmul.f32 1.442695, %v3628_v9  ;;  %vm1365_vm11 = vcmp.gt.f32.partialorder %v3619_v55, 0.0  ;;  %vm1366_vm12 = vcmp.gt.f32.partialorder %v3628_v9, 0.0 }
 0x200   :  { %2296 = vpow2.f32 %v1436_v46  ;;  %v1446_v5 = vmul.f32 1.442695, %v3632_v28  ;;  %v3646_v40 = vadd.f32 %v1291_v31, %v1018_v13  ;;  %v3651_v2 = vadd.f32 %v1182_v54, %v3603_v58  ;;  %v1693_v30 = vpop.permute.xlu0 %1692 }
 0x201   :  { %v1295_v60 = vpop.f32.mrf.mxu1  ;;  %v1184_v20 = vpop.f32.mrf.mxu0  ;;  %2298 = vpow2.f32 %v1440_v45  ;;  %v1444_v12 = vmul.f32 1.442695, %v3641_v11  ;;  %vm1368_vm13 = vcmp.gt.f32.partialorder %v3632_v28, 0.0  ;;  %vm1367_vm14 = vcmp.gt.f32.partialorder %v3641_v11, 0.0 }
 0x202   :  { %v2277_v27 = vpop.eup %2276  ;;  %2300 = vpow2.f32 %v1442_v18  ;;  %v3658_v38 = vadd.f32 %v1295_v60, %v3603_v58  ;;  %v1448_v63 = vmul.f32 1.442695, %v3646_v40  ;;  %v1450_v34 = vmul.f32 1.442695, %v3651_v2 }
 0x203   :  { %v3630_v61 = vpop.f32.mrf.mxu1  ;;  %v3634_v43 = vpop.f32.mrf.mxu0  ;;  %v2052_v15 = vadd.f32 -1.0, %v2277_v27  ;;  %2302 = vpow2.f32 %v1446_v5  ;;  %v3673_v16 = vadd.f32 %v1184_v20, %v3603_v58  ;;  %vm1369_vm15 = vcmp.gt.f32.partialorder %v3646_v40, 0.0 }
 0x204   :  { %v2279_v33 = vpop.eup %2278  ;;  %2304 = vpow2.f32 %v1444_v12  ;;  %v1454_v62 = vmul.f32 1.442695, %v3658_v38  ;;  %v1698_v27 = vpop.permute.xlu1 %1697 }
 0x205   :  { %v3643_v41 = vpop.f32.mrf.mxu1  ;;  %v2281_v57 = vpop.eup %2280  ;;  %v2054_v25 = vadd.f32 -1.0, %v2279_v33  ;;  %v1610_v54 = vsel %vm1354_vm0, %v3584_v35, %v2052_v15  ;;  %2306 = vpow2.f32 %v1448_v63  ;;  %v1452_v35 = vmul.f32 1.442695, %v3673_v16 }
 0x206   :  { %v3648_v0 = vpop.f32.mrf.mxu0  ;;  %v2283_v1 = vpop.eup %2282  ;;  %v2053_v10 = vadd.f32 -1.0, %v2281_v57  ;;  %2308 = vpow2.f32 %v1450_v34  ;;  %v1770_v33 = vmul.f32 %v1693_v30, %v1610_v54  ;;  %v3708_v57 = vadd.f32 %v3630_v61, %v3603_v58 }
 0x207   :  { %v2285_v4 = vpop.eup %2284  ;;  %v3660_v7 = vpop.f32.mrf.mxu1  ;;  %v2056_v13 = vadd.f32 -1.0, %v2283_v1  ;;  %v1612_v56 = vsel %vm1356_vm1, %v3586_v49, %v2054_v25  ;;  %2310 = vpow2.f32 %v1454_v62  ;;  %vm1370_vm0 = vcmp.gt.f32.partialorder %v3651_v2, 0.0 }
 0x208   :  { %v2287_v23 = vpop.eup %2286  ;;  %v3666_v51 = vpop.f32.mrf.mxu0  ;;  %v2058_v6 = vadd.f32 -1.0, %v2285_v4  ;;  %v1611_v48 = vsel %vm1355_vm2, %v3588_v8, %v2053_v10  ;;  %v1772_v4 = vmul.f32 %v1693_v30, %v1612_v56  ;;  %2312 = vpow2.f32 %v1452_v35 }
 0x209   :  { %v2289_v52 = vpop.eup %2288  ;;  %v2057_v37 = vadd.f32 -1.0, %v2287_v23  ;;  %v3680_v19 = vpop.f32.mrf.mxu1  ;;  %v1614_v20 = vsel %vm1358_vm4, %v3590_v32, %v2056_v13  ;;  %v1456_v34 = vmul.f32 1.442695, %v3708_v57  ;;  %v3741_v62 = vadd.f32 %v3660_v7, %v3608_v53 }
 0x20a   :  { %v2291_v39 = vpop.eup %2290  ;;  %v3691_v22 = vpop.f32.mrf.mxu0  ;;  %v2055_v60 = vadd.f32 -1.0, %v2289_v52  ;;  %v1616_v8 = vsel %vm1360_vm5, %v3593_v26, %v2058_v6  ;;  %v1771_v26 = vmul.f32 %v1693_v30, %v1611_v48  ;;  %v1774_v23 = vmul.f32 %v1698_v27, %v1614_v20 }
 0x20b   :  { %v2293_v31 = vpop.eup %2292  ;;  %v1615_v46 = vsel %vm1359_vm6, %v3596_v29, %v2057_v37  ;;  %v2059_v45 = vadd.f32 -1.0, %v2291_v39  ;;  %v1307_v5 = vpop.f32.mrf.mxu1  ;;  %v3712_v29 = vadd.f32 %v3634_v43, %v3608_v53  ;;  %v1776_v25 = vmul.f32 %v1698_v27, %v1616_v8 }
 0x20c   :  { %v2295_v49 = vpop.eup %2294  ;;  %v2060_v18 = vadd.f32 -1.0, %v2293_v31  ;;  %v3714_v15 = vpop.f32.mrf.mxu0  ;;  %v1613_v12 = vsel %vm1357_vm3, %v3600_v44, %v2055_v60  ;;  %v1775_v10 = vmul.f32 %v1698_v27, %v1615_v46  ;;  %v3725_v43 = vadd.f32 %v3643_v41, %v3608_v53 }
 0x20d   :  { %v2297_v32 = vpop.eup %2296  ;;  %v1617_v58 = vsel %vm1361_vm7, %v3606_v47, %v2059_v45  ;;  %v2062_v61 = vadd.f32 -1.0, %v2295_v49  ;;  %v3734_v47 = vadd.f32 %v3648_v0, %v3608_v53  ;;  %v3736_v52 = vpop.f32.mrf.mxu1  ;;  %v1773_v37 = vmul.f32 %v1693_v30, %v1613_v12 }
 0x20e   :  { %v2299_v1 = vpop.eup %2298  ;;  %v2061_v63 = vadd.f32 -1.0, %v2297_v32  ;;  %v1618_v13 = vsel %vm1362_vm8, %v3610_v59, %v2060_v18  ;;  %v1834_v39 = vadd.f32 %v1774_v23, %v1770_v33  ;;  %v1458_v41 = vmul.f32 1.442695, %v3712_v29  ;;  %v3743_v59 = vpop.f32.mrf.mxu0 }
 0x20f   :  { %v2063_v44 = vadd.f32 -1.0, %v2299_v1  ;;  %v2301_v6 = vpop.eup %2300  ;;  %v1703_v54 = vpop.permute.xlu1 %1702  ;;  %v1876_v56 = vadd.f32 %v1776_v25, %v1772_v4  ;;  %v1855_v48 = vadd.f32 %v1775_v10, %v1771_v26  ;;  %v1777_v60 = vmul.f32 %v1698_v27, %v1617_v58 }
 0x210   :  { %v2303_v31 = vpop.eup %2302  ;;  %v3747_v0 = vadd.f32 %v3666_v51, %v3621_v50  ;;  %v1778_v20 = vmul.f32 %v1703_v54, %v1618_v13  ;;  %v1620_v35 = vsel %vm1364_vm9, %v3613_v21, %v2062_v61  ;;  %v1619_v53 = vsel %vm1363_vm10, %v3616_v3, %v2061_v63  ;;  %v1311_v8 = vpop.f32.mrf.mxu1 }
 0x211   :  { %v1462_v7 = vmul.f32 1.442695, %v3725_v43  ;;  %v1621_v49 = vsel %vm1365_vm11, %v3619_v55, %v2063_v44  ;;  %v2064_v30 = vadd.f32 -1.0, %v2301_v6  ;;  %2314 = vpow2.f32 %v1456_v34  ;;  %v2305_v21 = vpop.eup %2304  ;;  %v1202_v55 = vpop.f32.mrf.mxu0 }
 0x212   :  { %v1460_v51 = vmul.f32 1.442695, %v3734_v47  ;;  %v2066_v46 = vadd.f32 -1.0, %v2303_v31  ;;  %2316 = vpow2.f32 %v1458_v41  ;;  %v1464_v3 = vmul.f32 1.442695, %v3741_v62  ;;  %v2307_v32 = vpop.eup %2306 }
 0x213   :  { %v3766_v45 = vadd.f32 %v3680_v19, %v3621_v50  ;;  %v1897_v27 = vadd.f32 %v1777_v60, %v1773_v37  ;;  %v1780_v33 = vmul.f32 %v1703_v54, %v1620_v35  ;;  %v1466_v18 = vmul.f32 1.442695, %v3747_v0  ;;  %v2309_v4 = vpop.eup %2308  ;;  %v3777_v19 = vpop.permute.xlu0 %1062 }
 0x214   :  { %v3771_v1 = vadd.f32 %v3691_v22, %v3621_v50  ;;  %v1835_v26 = vadd.f32 %v1834_v39, %v1778_v20  ;;  %v1779_v23 = vmul.f32 %v1703_v54, %v1619_v53  ;;  %vm1372_vm1 = vcmp.gt.f32.partialorder %v3658_v38, 0.0  ;;  %v1315_v22 = vpop.f32.mrf.mxu1  ;;  %v2311_v61 = vpop.eup %2310 }
 0x215   :  { %2318 = vpow2.f32 %v1462_v7  ;;  %v3775_v12 = vadd.f32 %v1307_v5, %v3621_v50  ;;  %v1781_v25 = vmul.f32 %v1703_v54, %v1621_v49  ;;  %v1622_v10 = vsel %vm1366_vm12, %v3628_v9, %v2064_v30  ;;  %v1204_v5 = vpop.f32.mrf.mxu0  ;;  %v2313_v6 = vpop.eup %2312 }
 0x216   :  { %v2065_v58 = vadd.f32 -1.0, %v2305_v21  ;;  %2320 = vpow2.f32 %v1460_v51  ;;  %v1624_v63 = vsel %vm1368_vm13, %v3632_v28, %v2066_v46  ;;  %v2067_v13 = vadd.f32 -1.0, %v2307_v32  ;;  %v1708_v37 = vpop.permute.xlu1 %1707  ;;  %v1317_v53 = vpop.f32.mrf.mxu1 }
 0x217   :  { %2322 = vpow2.f32 %v1464_v3  ;;  %v1470_v50 = vmul.f32 1.442695, %v3766_v45  ;;  %v2068_v44 = vadd.f32 -1.0, %v2309_v4  ;;  %vm1371_vm2 = vcmp.gt.f32.partialorder %v3673_v16, 0.0  ;;  %v3807_v7 = vpop.permute.xlu0 %1067 }
 0x218   :  { %2324 = vpow2.f32 %v1466_v18  ;;  %v1468_v34 = vmul.f32 1.442695, %v3771_v1  ;;  %v3790_v9 = vadd.f32 %v3714_v15, %v3623_v24  ;;  %v1877_v39 = vadd.f32 %v1876_v56, %v1780_v33 }
 0x219   :  { %v1856_v41 = vadd.f32 %v1855_v48, %v1779_v23  ;;  %v1472_v28 = vmul.f32 1.442695, %v3775_v12  ;;  %v3795_v31 = vadd.f32 %v3736_v52, %v3623_v24  ;;  %v1898_v54 = vadd.f32 %v1897_v27, %v1781_v25  ;;  %v1206_v52 = vpop.f32.mrf.mxu0 }
 0x21a   :  { %v1782_v60 = vmul.f32 %v1708_v37, %v1622_v10  ;;  %v1784_v20 = vmul.f32 %v1708_v37, %v1624_v63  ;;  %v2070_v35 = vadd.f32 -1.0, %v2311_v61  ;;  %v1623_v15 = vsel %vm1367_vm14, %v3641_v11, %v2065_v58  ;;  %v1713_v32 = vpop.permute.xlu1 %1712 }
 0x21b   :  { %v1625_v56 = vsel %vm1369_vm15, %v3646_v40, %v2067_v13  ;;  %2326 = vpow2.f32 %v1470_v50  ;;  %v3805_v48 = vadd.f32 %v3743_v59, %v3623_v24  ;;  %v1626_v49 = vsel %vm1370_vm0, %v3651_v2, %v2068_v44  ;;  %v3833_v4 = vpop.f32.mrf.mxu0  ;;  %v3841_v61 = vpop.permute.xlu0 %1072 }
 0x21c   :  { %2328 = vpow2.f32 %v1468_v34  ;;  %v1474_v30 = vmul.f32 1.442695, %v3790_v9  ;;  %v3814_v11 = vadd.f32 %v1311_v8, %v3623_v24  ;;  %v2069_v51 = vadd.f32 -1.0, %v2313_v6  ;;  %v3827_v24 = vpop.f32.mrf.mxu1 }
 0x21d   :  { %vm1373_vm3 = vcmp.gt.f32.partialorder %v3708_v57, 0.0  ;;  %2330 = vpow2.f32 %v1472_v28  ;;  %v1478_v40 = vmul.f32 1.442695, %v3795_v31  ;;  %v3819_v59 = vadd.f32 %v1202_v55, %v3636_v36 }
 0x21e   :  { %v1836_v21 = vadd.f32 %v1835_v26, %v1782_v60  ;;  %v1783_v46 = vmul.f32 %v1708_v37, %v1623_v15  ;;  %v1628_v2 = vsel %vm1372_vm1, %v3658_v38, %v2070_v35  ;;  %v3825_v3 = vadd.f32 %v1315_v22, %v3636_v36  ;;  %v2315_v8 = vpop.eup %2314 }
 0x21f   :  { %v1878_v27 = vadd.f32 %v1877_v39, %v1784_v20  ;;  %v1785_v33 = vmul.f32 %v1708_v37, %v1625_v56  ;;  %v1476_v18 = vmul.f32 1.442695, %v3805_v48  ;;  %v3831_v55 = vadd.f32 %v1204_v5, %v3636_v36  ;;  %v2317_v26 = vpop.eup %2316  ;;  %v3845_v5 = vpop.f32.mrf.mxu1 }
 0x220   :  { %v1786_v23 = vmul.f32 %v1713_v32, %v1626_v49  ;;  %vm1374_vm4 = vcmp.gt.f32.partialorder %v3712_v29, 0.0  ;;  %2332 = vpow2.f32 %v1474_v30  ;;  %v1480_v38 = vmul.f32 1.442695, %v3814_v11  ;;  %v3848_v37 = vpop.f32.mrf.mxu0 }
 0x221   :  { %v1788_v25 = vmul.f32 %v1713_v32, %v1628_v2  ;;  %v1627_v10 = vsel %vm1371_vm2, %v3673_v16, %v2069_v51  ;;  %2334 = vpow2.f32 %v1478_v40  ;;  %v1482_v58 = vmul.f32 1.442695, %v3819_v59  ;;  %v3860_v30 = vpop.f32.mrf.mxu1  ;;  %v1718_v2 = vpop.permute.xlu1 %1717 }
 0x222   :  { %v2319_v22 = vpop.eup %2318  ;;  %v1857_v63 = vadd.f32 %v1856_v41, %v1783_v46  ;;  %v2071_v13 = vadd.f32 -1.0, %v2315_v8  ;;  %vm1376_vm5 = vcmp.gt.f32.partialorder %v3725_v43, 0.0  ;;  %v1486_v50 = vmul.f32 1.442695, %v3825_v3 }
 0x223   :  { %v2321_v44 = vpop.eup %2320  ;;  %v1899_v34 = vadd.f32 %v1898_v54, %v1785_v33  ;;  %v2072_v6 = vadd.f32 -1.0, %v2317_v26  ;;  %2336 = vpow2.f32 %v1476_v18  ;;  %v1484_v16 = vmul.f32 1.442695, %v3831_v55 }
 0x224   :  { %v2323_v39 = vpop.eup %2322  ;;  %v1837_v28 = vadd.f32 %v1836_v21, %v1786_v23  ;;  %v1787_v60 = vmul.f32 %v1713_v32, %v1627_v10  ;;  %vm1375_vm6 = vcmp.gt.f32.partialorder %v3734_v47, 0.0  ;;  %2338 = vpow2.f32 %v1480_v38  ;;  %v3868_v21 = vpop.permute.xlu0 %1077 }
 0x225   :  { %v2325_v41 = vpop.eup %2324  ;;  %v1879_v20 = vadd.f32 %v1878_v27, %v1788_v25  ;;  %v2074_v35 = vadd.f32 -1.0, %v2319_v22  ;;  %2340 = vpow2.f32 %v1482_v58  ;;  %v3852_v15 = vadd.f32 %v1317_v53, %v3636_v36  ;;  %v3866_v36 = vpop.f32.mrf.mxu0 }
 0x226   :  { %v1629_v54 = vsel %vm1373_vm3, %v3708_v57, %v2071_v13  ;;  %v2073_v56 = vadd.f32 -1.0, %v2321_v44  ;;  %2342 = vpow2.f32 %v1486_v50  ;;  %v3858_v49 = vadd.f32 %v1206_v52, %v3638_v17  ;;  %v3882_v38 = vpop.f32.mrf.mxu1 }
 0x227   :  { %v1630_v51 = vsel %vm1374_vm4, %v3712_v29, %v2072_v6  ;;  %vm1377_vm7 = vcmp.gt.f32.partialorder %v3741_v62, 0.0  ;;  %v2075_v40 = vadd.f32 -1.0, %v2323_v39  ;;  %2344 = vpow2.f32 %v1484_v16  ;;  %v3892_v10 = vpop.f32.mrf.mxu0 }
 0x228   :  { %v2327_v53 = vpop.eup %2326  ;;  %v1858_v57 = vadd.f32 %v1857_v63, %v1787_v60  ;;  %vm1378_vm8 = vcmp.gt.f32.partialorder %v3747_v0, 0.0  ;;  %v2076_v52 = vadd.f32 -1.0, %v2325_v41  ;;  %vm1380_vm9 = vcmp.gt.f32.partialorder %v3766_v45, 0.0  ;;  %v1723_v6 = vpop.permute.xlu0 %1722 }
 0x229   :  { %v2329_v46 = vpop.eup %2328  ;;  %v1789_v8 = vmul.f32 %v1713_v32, %v1629_v54  ;;  %v1632_v29 = vsel %vm1376_vm5, %v3725_v43, %v2074_v35  ;;  %vm1379_vm10 = vcmp.gt.f32.partialorder %v3771_v1, 0.0  ;;  %v1488_v27 = vmul.f32 1.442695, %v3852_v15  ;;  %v3902_v60 = vpop.f32.mrf.mxu1 }
 0x22a   :  { %v2331_v33 = vpop.eup %2330  ;;  %v1790_v18 = vmul.f32 %v1718_v2, %v1630_v51  ;;  %v1631_v26 = vsel %vm1375_vm6, %v3734_v47, %v2073_v56  ;;  %vm1381_vm11 = vcmp.gt.f32.partialorder %v3775_v12, 0.0  ;;  %v1490_v23 = vmul.f32 1.442695, %v3858_v49  ;;  %v3913_v35 = vpop.f32.mrf.mxu0 }
 0x22b   :  { %v1633_v43 = vsel %vm1377_vm7, %v3741_v62, %v2075_v40  ;;  %v2078_v32 = vadd.f32 -1.0, %v2327_v53  ;;  %vm1382_vm12 = vcmp.gt.f32.partialorder %v3790_v9, 0.0  ;;  %v3890_v25 = vadd.f32 %v3827_v24, %v3638_v17 }
 0x22c   :  { %v1792_v47 = vmul.f32 %v1718_v2, %v1632_v29  ;;  %v1634_v58 = vsel %vm1378_vm8, %v3747_v0, %v2076_v52  ;;  %v2077_v22 = vadd.f32 -1.0, %v2329_v46  ;;  %vm1384_vm13 = vcmp.gt.f32.partialorder %v3795_v31, 0.0 }
 0x22d   :  { %v2333_v63 = vpop.eup %2332  ;;  %v1900_v13 = vadd.f32 %v1899_v34, %v1789_v8  ;;  %v1791_v62 = vmul.f32 %v1718_v2, %v1631_v26  ;;  %v2079_v50 = vadd.f32 -1.0, %v2331_v33  ;;  %2346 = vpow2.f32 %v1488_v27 }
 0x22e   :  { %v2335_v44 = vpop.eup %2334  ;;  %v1838_v16 = vadd.f32 %v1837_v28, %v1790_v18  ;;  %v1793_v24 = vmul.f32 %v1718_v2, %v1633_v43  ;;  %2348 = vpow2.f32 %v1490_v23  ;;  %v3900_v39 = vadd.f32 %v3833_v4, %v3638_v17  ;;  %v1331_v2 = vpop.f32.mrf.mxu1 }
 0x22f   :  { %v1794_v0 = vmul.f32 %v1723_v6, %v1634_v58  ;;  %v1636_v41 = vsel %vm1380_vm9, %v3766_v45, %v2078_v32  ;;  %vm1383_vm14 = vcmp.gt.f32.partialorder %v3805_v48, 0.0  ;;  %v1494_v34 = vmul.f32 1.442695, %v3890_v25 }
 0x230   :  { %v3911_v28 = vadd.f32 %v3845_v5, %v3638_v17  ;;  %v2337_v54 = vpop.eup %2336  ;;  %v1880_v4 = vadd.f32 %v1879_v20, %v1792_v47  ;;  %v1635_v56 = vsel %vm1379_vm10, %v3771_v1, %v2077_v22  ;;  %v2080_v51 = vadd.f32 -1.0, %v2333_v63 }
 0x231   :  { %vm1385_vm15 = vcmp.gt.f32.partialorder %v3814_v11, 0.0  ;;  %vm1386_vm0 = vcmp.gt.f32.partialorder %v3819_v59, 0.0  ;;  %v3922_v45 = vadd.f32 %v3848_v37, %v3662_v14  ;;  %v2339_v40 = vpop.eup %2338  ;;  %v1859_v17 = vadd.f32 %v1858_v57, %v1791_v62  ;;  %v1728_v62 = vpop.permute.xlu1 %1727 }
 0x232   :  { %v1637_v5 = vsel %vm1381_vm11, %v3775_v12, %v2079_v50  ;;  %v2082_v20 = vadd.f32 -1.0, %v2335_v44  ;;  %vm1388_vm1 = vcmp.gt.f32.partialorder %v3825_v3, 0.0  ;;  %v3930_v1 = vadd.f32 %v3860_v30, %v3662_v14  ;;  %v2341_v53 = vpop.eup %2340  ;;  %v1222_v30 = vpop.f32.mrf.mxu0 }
 0x233   :  { %v1901_v52 = vadd.f32 %v1900_v13, %v1793_v24  ;;  %v1796_v46 = vmul.f32 %v1723_v6, %v1636_v41  ;;  %vm1387_vm2 = vcmp.gt.f32.partialorder %v3831_v55, 0.0  ;;  %v1492_v37 = vmul.f32 1.442695, %v3900_v39  ;;  %v2343_v12 = vpop.eup %2342 }
 0x234   :  { %v3936_v57 = vadd.f32 %v3866_v36, %v3662_v14  ;;  %v1839_v8 = vadd.f32 %v1838_v16, %v1794_v0  ;;  %v1795_v29 = vmul.f32 %v1723_v6, %v1635_v56  ;;  %2350 = vpow2.f32 %v1494_v34  ;;  %v2345_v33 = vpop.eup %2344 }
 0x235   :  { %v1496_v27 = vmul.f32 1.442695, %v3911_v28  ;;  %v1797_v18 = vmul.f32 %v1723_v6, %v1637_v5  ;;  %v1638_v26 = vsel %vm1382_vm12, %v3790_v9, %v2080_v51  ;;  %v2081_v23 = vadd.f32 -1.0, %v2337_v54  ;;  %v1335_v9 = vpop.f32.mrf.mxu1  ;;  %v1224_v6 = vpop.f32.mrf.mxu0 }
 0x236   :  { %v1498_v43 = vmul.f32 1.442695, %v3922_v45  ;;  %v1640_v36 = vsel %vm1384_vm13, %v3795_v31, %v2082_v20  ;;  %v2083_v32 = vadd.f32 -1.0, %v2339_v40  ;;  %v2084_v47 = vadd.f32 -1.0, %v2341_v53  ;;  %v1733_v51 = vpop.permute.xlu0 %1732 }
 0x237   :  { %v1502_v58 = vmul.f32 1.442695, %v3930_v1  ;;  %v2086_v22 = vadd.f32 -1.0, %v2343_v12  ;;  %2352 = vpow2.f32 %v1492_v37  ;;  %v1500_v63 = vmul.f32 1.442695, %v3936_v57  ;;  %v1226_v5 = vpop.f32.mrf.mxu0 }
 0x238   :  { %v3950_v13 = vadd.f32 %v3882_v38, %v3662_v14  ;;  %v1881_v50 = vadd.f32 %v1880_v4, %v1796_v46  ;;  %v2085_v44 = vadd.f32 -1.0, %v2345_v33  ;;  %2354 = vpow2.f32 %v1496_v27  ;;  %v1337_v4 = vpop.f32.mrf.mxu1 }
 0x239   :  { %v3954_v31 = vadd.f32 %v3892_v10, %v3668_v42  ;;  %v1860_v16 = vadd.f32 %v1859_v17, %v1795_v29  ;;  %v1798_v24 = vmul.f32 %v1728_v62, %v1638_v26  ;;  %v1639_v0 = vsel %vm1383_vm14, %v3805_v48, %v2081_v23  ;;  %v1228_v26 = vpop.f32.mrf.mxu0 }
 0x23a   :  { %vm1389_vm3 = vcmp.gt.f32.partialorder %v3852_v15, 0.0  ;;  %2356 = vpow2.f32 %v1498_v43  ;;  %v1800_v14 = vmul.f32 %v1728_v62, %v1640_v36  ;;  %v1641_v38 = vsel %vm1385_vm15, %v3814_v11, %v2083_v32  ;;  %v2347_v41 = vpop.eup %2346 }
 0x23b   :  { %v1642_v10 = vsel %vm1386_vm0, %v3819_v59, %v2084_v47  ;;  %vm1390_vm4 = vcmp.gt.f32.partialorder %v3858_v49, 0.0  ;;  %2358 = vpow2.f32 %v1502_v58  ;;  %v1902_v34 = vadd.f32 %v1901_v52, %v1797_v18  ;;  %v2349_v56 = vpop.eup %2348 }
 0x23c   :  { %v1644_v48 = vsel %vm1388_vm1, %v3825_v3, %v2086_v22  ;;  %2360 = vpow2.f32 %v1500_v63  ;;  %v1504_v54 = vmul.f32 1.442695, %v3950_v13  ;;  %v1799_v11 = vmul.f32 %v1728_v62, %v1639_v0 }
 0x23d   :  { %v1643_v59 = vsel %vm1387_vm2, %v3831_v55, %v2085_v44  ;;  %v1506_v40 = vmul.f32 1.442695, %v3954_v31  ;;  %v3977_v17 = vadd.f32 %v3902_v60, %v3668_v42  ;;  %v1840_v20 = vadd.f32 %v1839_v8, %v1798_v24  ;;  %v1339_v8 = vpop.f32.mrf.mxu1  ;;  %v1738_v24 = vpop.permute.xlu1 %1737 }
 0x23e   :  { %v1801_v3 = vmul.f32 %v1728_v62, %v1641_v38  ;;  %v1802_v53 = vmul.f32 %v1733_v51, %v1642_v10  ;;  %v3981_v52 = vadd.f32 %v3913_v35, %v3668_v42  ;;  %v1882_v46 = vadd.f32 %v1881_v50, %v1800_v14 }
 0x23f   :  { %v1804_v37 = vmul.f32 %v1733_v51, %v1644_v48  ;;  %v2087_v12 = vadd.f32 -1.0, %v2347_v41  ;;  %v3984_v29 = vadd.f32 %v1331_v2, %v3668_v42  ;;  %v1803_v55 = vmul.f32 %v1733_v51, %v1643_v59  ;;  %v1341_v50 = vpop.f32.mrf.mxu1 }
 0x240   :  { %v2088_v27 = vadd.f32 -1.0, %v2349_v56  ;;  %vm1392_vm5 = vcmp.gt.f32.partialorder %v3890_v25, 0.0  ;;  %2362 = vpow2.f32 %v1504_v54  ;;  %v3988_v60 = vadd.f32 %v1222_v30, %v3777_v19 }
 0x241   :  { %v1861_v33 = vadd.f32 %v1860_v16, %v1799_v11  ;;  %2364 = vpow2.f32 %v1506_v40  ;;  %v1510_v35 = vmul.f32 1.442695, %v3977_v17  ;;  %v3992_v18 = vadd.f32 %v1335_v9, %v3777_v19  ;;  %v2351_v23 = vpop.eup %2350  ;;  %v1232_v16 = vpop.f32.mrf.mxu0 }
 0x242   :  { %v1903_v42 = vadd.f32 %v1902_v34, %v1801_v3  ;;  %v1841_v2 = vadd.f32 %v1840_v20, %v1802_v53  ;;  %v1508_v43 = vmul.f32 1.442695, %v3981_v52  ;;  %v3996_v36 = vadd.f32 %v1224_v6, %v3777_v19  ;;  %v1345_v20 = vpop.f32.mrf.mxu1 }
 0x243   :  { %v3998_v32 = vadd.f32 %v1882_v46, %v1804_v37  ;;  %v1645_v30 = vsel %vm1389_vm3, %v3852_v15, %v2087_v12  ;;  %v1512_v47 = vmul.f32 1.442695, %v3984_v29  ;;  %v4005_v58 = vadd.f32 %v1337_v4, %v3777_v19 }
 0x244   :  { %v4007_v22 = vadd.f32 %v1861_v33, %v1803_v55  ;;  %v1646_v63 = vsel %vm1390_vm4, %v3858_v49, %v2088_v27  ;;  %v1514_v9 = vmul.f32 1.442695, %v3988_v60  ;;  %v4014_v62 = vadd.f32 %v1226_v5, %v3807_v7  ;;  %v2353_v44 = vpop.eup %2352 }
 0x245   :  { %v2090_v6 = vadd.f32 -1.0, %v2351_v23  ;;  %vm1391_vm6 = vcmp.gt.f32.partialorder %v3900_v39, 0.0  ;;  %vm1393_vm7 = vcmp.gt.f32.partialorder %v3911_v28, 0.0  ;;  %2366 = vpow2.f32 %v1510_v35  ;;  %v2355_v49 = vpop.eup %2354 }
 0x246   :  { %v1518_v19 = vmul.f32 1.442695, %v3992_v18  ;;  %v4020_v15 = vadd.f32 %v1339_v8, %v3807_v7  ;;  %v1805_v0 = vmul.f32 %v1733_v51, %v1645_v30  ;;  %2368 = vpow2.f32 %v1508_v43  ;;  %v1234_v8 = vpop.f32.mrf.mxu0 }
 0x247   :  { %v1516_v14 = vmul.f32 1.442695, %v3996_v36  ;;  %v4024_v38 = vadd.f32 %v1228_v26, %v3807_v7  ;;  %v2357_v10 = vpop.eup %2356  ;;  %v1806_v41 = vmul.f32 %v1738_v24, %v1646_v63  ;;  %2370 = vpow2.f32 %v1512_v47  ;;  %v1743_v63 = vpop.permute.xlu0 %1742 }
 0x248   :  { %v1520_v34 = vmul.f32 1.442695, %v4005_v58  ;;  %v4028_v48 = vadd.f32 %v1341_v50, %v3807_v7  ;;  %v2359_v54 = vpop.eup %2358  ;;  %vm1394_vm8 = vcmp.gt.f32.partialorder %v3922_v45, 0.0  ;;  %2372 = vpow2.f32 %v1514_v9 }
 0x249   :  { %v1522_v4 = vmul.f32 1.442695, %v4014_v62  ;;  %v4033_v56 = vadd.f32 %v1232_v16, %v3841_v61  ;;  %v2361_v51 = vpop.eup %2360  ;;  %v1648_v11 = vsel %vm1392_vm5, %v3890_v25, %v2090_v6  ;;  %vm1396_vm9 = vcmp.gt.f32.partialorder %v3930_v1, 0.0  ;;  %v1236_v16 = vpop.f32.mrf.mxu0 }
 0x24a   :  { %2374 = vpow2.f32 %v1518_v19  ;;  %v1526_v7 = vmul.f32 1.442695, %v4020_v15  ;;  %v2089_v59 = vadd.f32 -1.0, %v2353_v44  ;;  %v2091_v40 = vadd.f32 -1.0, %v2355_v49 }
 0x24b   :  { %2376 = vpow2.f32 %v1516_v14  ;;  %v1524_v5 = vmul.f32 1.442695, %v4024_v38  ;;  %v2092_v3 = vadd.f32 -1.0, %v2357_v10  ;;  %v2094_v53 = vadd.f32 -1.0, %v2359_v54 }
 0x24c   :  { %2378 = vpow2.f32 %v1520_v34  ;;  %v1528_v46 = vmul.f32 1.442695, %v4028_v48  ;;  %v1904_v37 = vadd.f32 %v1903_v42, %v1805_v0  ;;  %v2093_v12 = vadd.f32 -1.0, %v2361_v51  ;;  %v1347_v42 = vpop.f32.mrf.mxu1 }
 0x24d   :  { %2380 = vpow2.f32 %v1522_v4  ;;  %v1530_v25 = vmul.f32 1.442695, %v4033_v56  ;;  %v2363_v55 = vpop.eup %2362  ;;  %v1842_v27 = vadd.f32 %v1841_v2, %v1806_v41  ;;  %vm1395_vm10 = vcmp.gt.f32.partialorder %v3936_v57, 0.0 }
 0x24e   :  { %vm1397_vm11 = vcmp.gt.f32.partialorder %v3950_v13, 0.0  ;;  %2382 = vpow2.f32 %v1526_v7  ;;  %v2365_v33 = vpop.eup %2364  ;;  %v1808_v35 = vmul.f32 %v1738_v24, %v1648_v11  ;;  %v1647_v26 = vsel %vm1391_vm6, %v3900_v39, %v2089_v59 }
 0x24f   :  { %v1649_v23 = vsel %vm1393_vm7, %v3911_v28, %v2091_v40  ;;  %2384 = vpow2.f32 %v1524_v5  ;;  %v1650_v2 = vsel %vm1394_vm8, %v3922_v45, %v2092_v3  ;;  %v1652_v43 = vsel %vm1396_vm9, %v3930_v1, %v2094_v53 }
 0x250   :  { %2386 = vpow2.f32 %v1528_v46  ;;  %v4058_v30 = vadd.f32 %v1345_v20, %v3841_v61  ;;  %v1651_v39 = vsel %vm1395_vm10, %v3936_v57, %v2093_v12  ;;  %v2095_v47 = vadd.f32 -1.0, %v2363_v55  ;;  %v1349_v57 = vpop.f32.mrf.mxu1 }
 0x251   :  { %2388 = vpow2.f32 %v1530_v25  ;;  %v4062_v28 = vadd.f32 %v1234_v8, %v3841_v61  ;;  %v1807_v9 = vmul.f32 %v1738_v24, %v1647_v26  ;;  %v1809_v50 = vmul.f32 %v1738_v24, %v1649_v23 }
 0x252   :  { %v2096_v44 = vadd.f32 -1.0, %v2365_v33  ;;  %v1534_v45 = vmul.f32 1.442695, %v4058_v30  ;;  %v2367_v6 = vpop.eup %2366  ;;  %v1810_v19 = vmul.f32 %v1743_v63, %v1650_v2  ;;  %v1812_v1 = vmul.f32 %v1743_v63, %v1652_v43  ;;  %v1351_v40 = vpop.f32.mrf.mxu1 }
 0x253   :  { %vm1398_vm12 = vcmp.gt.f32.partialorder %v3954_v31, 0.0  ;;  %vm1400_vm13 = vcmp.gt.f32.partialorder %v3977_v17, 0.0  ;;  %v2369_v49 = vpop.eup %2368  ;;  %v1811_v0 = vmul.f32 %v1743_v63, %v1651_v39  ;;  %vm1399_vm14 = vcmp.gt.f32.partialorder %v3981_v52, 0.0 }
 0x254   :  { %vm1401_vm15 = vcmp.gt.f32.partialorder %v3984_v29, 0.0  ;;  %2390 = vpow2.f32 %v1534_v45  ;;  %v2371_v24 = vpop.eup %2370  ;;  %v1884_v14 = vadd.f32 %v3998_v32, %v1808_v35  ;;  %v1653_v10 = vsel %vm1397_vm11, %v3950_v13, %v2095_v47 }
 0x255   :  { %vm1402_vm0 = vcmp.gt.f32.partialorder %v3988_v60, 0.0  ;;  %v1532_v41 = vmul.f32 1.442695, %v4062_v28  ;;  %v4076_v34 = vadd.f32 %v1347_v42, %v3841_v61  ;;  %v2373_v54 = vpop.eup %2372  ;;  %v1863_v4 = vadd.f32 %v4007_v22, %v1807_v9  ;;  %v1238_v22 = vpop.f32.mrf.mxu0 }
 0x256   :  { %v4079_v51 = vadd.f32 %v1904_v37, %v1809_v50  ;;  %v1654_v32 = vsel %vm1398_vm12, %v3954_v31, %v2096_v44  ;;  %vm1404_vm1 = vcmp.gt.f32.partialorder %v3992_v18, 0.0  ;;  %v4086_v13 = vadd.f32 %v1236_v16, %v3868_v21  ;;  %v1748_v31 = vpop.permute.xlu1 %1747 }
 0x257   :  { %v2375_v11 = vpop.eup %2374  ;;  %v4088_v7 = vadd.f32 %v1842_v27, %v1810_v19  ;;  %v4090_v59 = vadd.f32 %v1884_v14, %v1812_v1  ;;  %v2098_v61 = vadd.f32 -1.0, %v2367_v6  ;;  %vm1403_vm2 = vcmp.gt.f32.partialorder %v3996_v36, 0.0 }
 0x258   :  { %vm1405_vm3 = vcmp.gt.f32.partialorder %v4005_v58, 0.0  ;;  %2392 = vpow2.f32 %v1532_v41  ;;  %v2377_v5 = vpop.eup %2376  ;;  %v4094_v20 = vadd.f32 %v1863_v4, %v1811_v0  ;;  %v1813_v3 = vmul.f32 %v1743_v63, %v1653_v10 }
 0x259   :  { %v2097_v53 = vadd.f32 -1.0, %v2369_v49  ;;  %vm1406_vm4 = vcmp.gt.f32.partialorder %v4014_v62, 0.0  ;;  %v1536_v46 = vmul.f32 1.442695, %v4076_v34  ;;  %v2379_v37 = vpop.eup %2378  ;;  %v1814_v12 = vmul.f32 %v1748_v31, %v1654_v32 }
 0x25a   :  { %v2099_v25 = vadd.f32 -1.0, %v2371_v24  ;;  %vm1408_vm5 = vcmp.gt.f32.partialorder %v4020_v15, 0.0  ;;  %v1538_v55 = vmul.f32 1.442695, %v4086_v13  ;;  %v4101_v27 = vadd.f32 %v1349_v57, %v3868_v21  ;;  %v2381_v8 = vpop.eup %2380 }
 0x25b   :  { %v2100_v33 = vadd.f32 -1.0, %v2373_v54  ;;  %vm1407_vm6 = vcmp.gt.f32.partialorder %v4024_v38, 0.0  ;;  %2394 = vpow2.f32 %v1536_v46  ;;  %v4105_v35 = vadd.f32 %v1238_v22, %v3868_v21  ;;  %v2383_v23 = vpop.eup %2382 }
 0x25c   :  { %v4108_v26 = vadd.f32 %v1351_v40, %v3868_v21  ;;  %v1656_v42 = vsel %vm1400_vm13, %v3977_v17, %v2098_v61  ;;  %v2102_v2 = vadd.f32 -1.0, %v2375_v11  ;;  %vm1409_vm7 = vcmp.gt.f32.partialorder %v4028_v48, 0.0  ;;  %v2385_v39 = vpop.eup %2384 }
 0x25d   :  { %2396 = vpow2.f32 %v1538_v55  ;;  %v1542_v43 = vmul.f32 1.442695, %v4101_v27  ;;  %v1655_v47 = vsel %vm1399_vm14, %v3981_v52, %v2097_v53  ;;  %v2101_v63 = vadd.f32 -1.0, %v2377_v5  ;;  %v2387_v50 = vpop.eup %2386 }
 0x25e   :  { %v2103_v9 = vadd.f32 -1.0, %v2379_v37  ;;  %vm1410_vm8 = vcmp.gt.f32.partialorder %v4033_v56, 0.0  ;;  %v1540_v21 = vmul.f32 1.442695, %v4105_v35  ;;  %v1657_v17 = vsel %vm1401_vm15, %v3984_v29, %v2099_v25  ;;  %v2389_v6 = vpop.eup %2388  ;;  %v1753_v29 = vpop.permute.xlu0 %1752 }
 0x25f   :  { %v2104_v44 = vadd.f32 -1.0, %v2381_v8  ;;  %2398 = vpow2.f32 %v1542_v43  ;;  %v1544_v45 = vmul.f32 1.442695, %v4108_v26  ;;  %v1816_v19 = vmul.f32 %v1748_v31, %v1656_v42 }
 0x260   :  { %v1658_v52 = vsel %vm1402_vm0, %v3988_v60, %v2100_v33  ;;  %v2106_v1 = vadd.f32 -1.0, %v2383_v23  ;;  %2400 = vpow2.f32 %v1540_v21  ;;  %v1815_v16 = vmul.f32 %v1748_v31, %v1655_v47 }
 0x261   :  { %v1660_v57 = vsel %vm1404_vm1, %v3992_v18, %v2102_v2  ;;  %v2105_v49 = vadd.f32 -1.0, %v2385_v39  ;;  %2402 = vpow2.f32 %v1544_v45  ;;  %v1817_v0 = vmul.f32 %v1748_v31, %v1657_v17  ;;  %v2391_v10 = vpop.eup %2390 }
 0x262   :  { %v1659_v24 = vsel %vm1403_vm2, %v3996_v36, %v2101_v63  ;;  %v1661_v14 = vsel %vm1405_vm3, %v4005_v58, %v2103_v9  ;;  %v2107_v60 = vadd.f32 -1.0, %v2387_v50  ;;  %v1906_v41 = vadd.f32 %v4079_v51, %v1813_v3  ;;  %v1758_v58 = vpop.permute.xlu1 %1757 }
 0x263   :  { %v1818_v54 = vmul.f32 %v1753_v29, %v1658_v52  ;;  %v1662_v18 = vsel %vm1406_vm4, %v4014_v62, %v2104_v44  ;;  %v2108_v4 = vadd.f32 -1.0, %v2389_v6  ;;  %v1844_v32 = vadd.f32 %v4088_v7, %v1814_v12 }
 0x264   :  { %v1886_v11 = vadd.f32 %v4090_v59, %v1816_v19  ;;  %v1820_v61 = vmul.f32 %v1753_v29, %v1660_v57  ;;  %v1664_v36 = vsel %vm1408_vm5, %v4020_v15, %v2106_v1  ;;  %v1819_v22 = vmul.f32 %v1753_v29, %v1659_v24 }
 0x265   :  { %v1821_v40 = vmul.f32 %v1753_v29, %v1661_v14  ;;  %v1663_v51 = vsel %vm1407_vm6, %v4024_v38, %v2105_v49  ;;  %v2110_v5 = vadd.f32 -1.0, %v2391_v10  ;;  %v2393_v31 = vpop.eup %2392  ;;  %v1865_v62 = vadd.f32 %v4094_v20, %v1815_v16  ;;  %v1763_v20 = vpop.permute.xlu0 %1762 }
 0x266   :  { %v1907_v3 = vadd.f32 %v1906_v41, %v1817_v0  ;;  %v1822_v7 = vmul.f32 %v1758_v58, %v1662_v18  ;;  %v1665_v59 = vsel %vm1409_vm7, %v4028_v48, %v2107_v60  ;;  %v1845_v53 = vadd.f32 %v1844_v32, %v1818_v54  ;;  %v1768_v17 = vpop.permute.xlu1 %1767 }
 0x267   :  { %v1824_v46 = vmul.f32 %v1758_v58, %v1664_v36  ;;  %v1666_v15 = vsel %vm1410_vm8, %v4033_v56, %v2108_v4  ;;  %v2109_v37 = vadd.f32 -1.0, %v2393_v31  ;;  %v1887_v12 = vadd.f32 %v1886_v11, %v1820_v61 }
 0x268   :  { %v1823_v25 = vmul.f32 %v1758_v58, %v1663_v51  ;;  %vm1412_vm9 = vcmp.gt.f32.partialorder %v4058_v30, 0.0  ;;  %vm1411_vm10 = vcmp.gt.f32.partialorder %v4062_v28, 0.0  ;;  %v2395_v38 = vpop.eup %2394  ;;  %v1866_v55 = vadd.f32 %v1865_v62, %v1819_v22 }
 0x269   :  { %v1908_v8 = vadd.f32 %v1907_v3, %v1821_v40  ;;  %v1825_v33 = vmul.f32 %v1758_v58, %v1665_v59  ;;  %v1668_v48 = vsel %vm1412_vm9, %v4058_v30, %v2110_v5  ;;  %v1846_v42 = vadd.f32 %v1845_v53, %v1822_v7 }
 0x26a   :  { %v2397_v23 = vpop.eup %2396  ;;  %v1826_v2 = vmul.f32 %v1763_v20, %v1666_v15  ;;  %v1667_v43 = vsel %vm1411_vm10, %v4062_v28, %v2109_v37  ;;  %v2111_v56 = vadd.f32 -1.0, %v2395_v38  ;;  %v1888_v39 = vadd.f32 %v1887_v12, %v1824_v46  ;;  %v1922_v15 = vpop.permute.xlu0 %1921 }
 0x26b   :  { %vm1413_vm11 = vcmp.gt.f32.partialorder %v4076_v34, 0.0  ;;  %vm1414_vm12 = vcmp.gt.f32.partialorder %v4086_v13, 0.0  ;;  %v2112_v47 = vadd.f32 -1.0, %v2397_v23  ;;  %v1867_v9 = vadd.f32 %v1866_v55, %v1823_v25 }
 0x26c   :  { %v2399_v63 = vpop.eup %2398  ;;  %v1828_v21 = vmul.f32 %v1763_v20, %v1668_v48  ;;  %v1669_v50 = vsel %vm1413_vm11, %v4076_v34, %v2111_v56  ;;  %vm1416_vm13 = vcmp.gt.f32.partialorder %v4101_v27, 0.0  ;;  %v1909_v44 = vadd.f32 %v1908_v8, %v1825_v33  ;;  %v4244_v33 = vld [vmem:[#allocation7_spill] sm:$0xff]  ;;  %v4245_v56 = vld [vmem:[#allocation6_spill] sm:$0xff] }
 0x26d   :  { %v2401_v30 = vpop.eup %2400  ;;  %v1827_v45 = vmul.f32 %v1763_v20, %v1667_v43  ;;  %v1670_v28 = vsel %vm1414_vm12, %v4086_v13, %v2112_v47  ;;  %v2114_v6 = vadd.f32 -1.0, %v2399_v63  ;;  %v1847_v52 = vadd.f32 %v1846_v42, %v1826_v2 }
 0x26e   :  { %v2403_v19 = vpop.eup %2402  ;;  %v1829_v1 = vmul.f32 %v1763_v20, %v1669_v50  ;;  %v1830_v16 = vmul.f32 %v1768_v17, %v1670_v28  ;;  %v2113_v57 = vadd.f32 -1.0, %v2401_v30  ;;  %vm1415_vm14 = vcmp.gt.f32.partialorder %v4105_v35, 0.0 }
 0x26f   :  { %v1672_v49 = vsel %vm1416_vm13, %v4101_v27, %v2114_v6  ;;  %vm1417_vm15 = vcmp.gt.f32.partialorder %v4108_v26, 0.0  ;;  %v2115_v34 = vadd.f32 -1.0, %v2403_v19  ;;  %v1889_v29 = vadd.f32 %v1888_v39, %v1828_v21 }
 0x270   :  { %v1848_v0 = vadd.f32 %v1847_v52, %v1830_v16  ;;  %v1832_v24 = vmul.f32 %v1768_v17, %v1672_v49  ;;  %v1671_v14 = vsel %vm1415_vm14, %v4105_v35, %v2113_v57  ;;  %v1868_v60 = vadd.f32 %v1867_v9, %v1827_v45 }
 0x271   :  { %v1831_v13 = vmul.f32 %v1768_v17, %v1671_v14  ;;  %v1673_v10 = vsel %vm1417_vm15, %v4108_v26, %v2115_v34  ;;  %v1910_v41 = vadd.f32 %v1909_v44, %v1829_v1  ;;  %v2428_v3 = vmov 1966171168  }
 0x272   :  { %v1849_v54 = vrot.slane %v1848_v0, 4  ;;  %v1890_v18 = vadd.f32 %v1889_v29, %v1832_v24  ;;  %v1833_v4 = vmul.f32 %v1768_v17, %v1673_v10  ;;  %v1939_v7 = vunpack.c.l.s4 %v2428_v3 }
 0x273   :  { %v1869_v32 = vadd.f32 %v1868_v60, %v1831_v13  ;;  %v1927_v48 = vrot.slane %v1922_v15, %v4244_v33  ;;  %v4246_v44 = vlaneseq }
 0x274   :  { %v1850_v27 = vadd.f32 %v1849_v54, %v1848_v0  ;;  %v1891_v11 = vrot.slane %v1890_v18, 4  ;;  %v1911_v61 = vadd.f32 %v1910_v41, %v1833_v4  ;;  %v1940_v20 = vunpack.c.0.s8 %v1939_v7 }
 0x275   :  { %v1870_v36 = vrot.slane %v1869_v32, 4  ;;  %vm1963_vm0 = vcmp.lt.s32.totalorder %v4246_v44, 512 }
 0x276   :  { %v1851_v58 = vrot.slane %v1850_v27, 2  ;;  %v1892_v22 = vadd.f32 %v1891_v11, %v1890_v18  ;;  %v1912_v40 = vrot.slane %v1911_v61, 4  ;;  %v1943_v39 = vsub.s32 %v1940_v20, %v4245_v56 }
 0x277   :  { %v1871_v51 = vadd.f32 %v1870_v36, %v1869_v32 }
 0x278   :  { %v1852_v5 = vadd.f32 %v1851_v58, %v1850_v27  ;;  %v1893_v31 = vrot.slane %v1892_v22, 2  ;;  %v1913_v35 = vadd.f32 %v1912_v40, %v1911_v61 }
 0x279   :  { %v1872_v62 = vrot.slane %v1871_v51, 2 }
 0x27a   :  { %v1853_v26 = vrot.slane %v1852_v5, 1  ;;  %v1894_v59 = vadd.f32 %v1893_v31, %v1892_v22  ;;  %v1914_v53 = vrot.slane %v1913_v35, 2 }
 0x27b   :  { %v1873_v46 = vadd.f32 %v1872_v62, %v1871_v51 }
 0x27c   :  { %v1895_v37 = vrot.slane %v1894_v59, 1  ;;  %v1915_v12 = vadd.f32 %v1914_v53, %v1913_v35  ;;  %v1854_v38 = vadd.f32 %v1853_v26, %v1852_v5 }
 0x27d   :  { %v1874_v25 = vrot.slane %v1873_v46, 1 }
 0x27e   :  { %v1916_v55 = vrot.slane %v1915_v12, 1  ;;  %v1896_v8 = vadd.f32 %v1895_v37, %v1894_v59  ;;  %v1928_v2 = vadd.f32 %v1927_v48, %v1854_v38 }
 0x27f   :  { %v1875_v23 = vadd.f32 %v1874_v25, %v1873_v46 }
 0x280   :  { %v1917_v42 = vadd.f32 %v1916_v55, %v1915_v12  ;;  %v1930_v47 = vadd.f32 %v1927_v48, %v1896_v8 }
 0x281   :  { %v1929_v43 = vadd.f32 %v1927_v48, %v1875_v23 }
 0x282   :  { %v1931_v63 = vadd.f32 %v1927_v48, %v1917_v42 }
 0x283   :  { %v1936_v9 = vcombine.low %v1928_v2, %v1929_v43 }
 0x284   :  { %v1937_v21 = vcombine.low %v1930_v47, %v1931_v63 }
 0x285   :  { %v1944_v50 = vrot.slane %v1936_v9, %v1943_v39 }
 0x286   :  { %v1951_v30 = vrot.slane %v1937_v21, %v1943_v39 }
 0x288   :  { %v1952_v17 = vcombine.low %v1944_v50, %v1951_v30 }
 0x28a   :  { %v1959_v45 = vrot.slane %v1952_v17, %v1943_v39 }
 0x28c   :  { %1965 = vst.msk [vmem:[#allocation3] sm:$0xf] %vm1963_vm0, %v1959_v45 }
 0x28d   :  { %2415 = shalt.err (!%p2412_p4)
}
 0x28e   :  { %1975 = dma.vmem_to_hbm [thread:$0]  %s1973_s0, 64, %s4182_s7, [#allocation4]  }
 0x28f   :  { %2424 = dma.done.wait [#allocation4], 64  }
 0x290   :  { %2425 = vsyncadd [#allocation4], 4294967232 }
 0x291   :  { %1979 = vsyncpa [#allocation4], 1 }

</bundles_post_ra>
